<compile_context>
chip_gen: v7x
topology: tpu7x:2x2x1
jax: 0.10.0
libtpu: 0.0.40
codegen_flags: <defaults>
</compile_context>

<pallas_src>
import functools

import jax
import jax.numpy as jnp
import numpy as np
from jax import lax
from jax.experimental import pallas as pl
from jax.experimental.pallas import tpu as pltpu

_NEG_BIG = -1e30  # finite "minus infinity": keeps exp/max NaN-free on fully masked lanes


def _round_up(x, m):
    return ((x + m - 1) // m) * m


def _supcon_kernel(lab_row_ref, lab_col_ref, fr_ref, fc_ref, out_ref,
                   m_scr, s_scr, p_scr, c_scr,
                   *, scale, n_valid, block_m, block_n, fc_resident, has_pad):
    # lab_row_ref: [B, 1] i32   row-tile labels
    # lab_col_ref: [1, B] i32   col-tile labels
    # fr_ref     : [B, D] bf16  anchor rows            (1/temp already folded in)
    # fc_ref     : [B, D] (or [n_pad, D] if resident) bf16 contrast features
    # out_ref    : [B, 1] f32   per-anchor loss (written at last column step)
    # m/s/p/c scratches: [B, 128] f32 per-lane partials (max / sum-exp / pos*logit / pos)
    i = pl.program_id(0)
    j = pl.program_id(1)
    nj = pl.num_programs(1)
    nchunks = block_n // 128

    @pl.when(j == 0)
    def _init():
        m_scr[...] = jnp.full_like(m_scr, _NEG_BIG)
        s_scr[...] = jnp.zeros_like(s_scr)
        p_scr[...] = jnp.zeros_like(p_scr)
        c_scr[...] = jnp.zeros_like(c_scr)

    if fc_resident:
        col0 = pl.multiple_of(j * block_n, block_n)
        fc = fc_ref[pl.ds(col0, block_n), :]
    else:
        fc = fc_ref[...]

    # [B, B] logits tile: NT matmul on the MXU (both operands contract on the lane
    # dim -> no transpose materialized), bf16 in, f32 accumulate.
    s = lax.dot_general(fr_ref[...], fc,
                        dimension_numbers=(((1,), (1,)), ((), ())),
                        preferred_element_type=jnp.float32)

    lab_row = lab_row_ref[...]    # (B, 1)
    lab_col = lab_col_ref[...]    # (1, B)

    def _accumulate(masked):
        # Fold block_n -> 128 lanes with VPU max/add; cross-lane XLU reductions are
        # deferred to the epilogue.
        if masked:
            row_ids = i * block_m + lax.broadcasted_iota(jnp.int32, (block_m, 1), 0)

        chunk_s, chunk_pos, chunk_msk = [], [], []
        for c in range(nchunks):
            sc = s[:, c * 128:(c + 1) * 128]
            pos = lab_row == lab_col[:, c * 128:(c + 1) * 128]
            if masked:
                col_ids = (j * block_n + c * 128) + lax.broadcasted_iota(
                    jnp.int32, (1, 128), 1)
                # drop padded columns and the self-contrast diagonal
                msk = jnp.logical_and(col_ids < n_valid, row_ids != col_ids)
                pos = jnp.logical_and(pos, msk)
            else:
                msk = None
            chunk_s.append(sc)
            chunk_pos.append(pos.astype(jnp.float32))
            chunk_msk.append(msk)

        if masked:
            max_src = [jnp.where(m, sc, _NEG_BIG)
                       for sc, m in zip(chunk_s, chunk_msk)]
        else:
            max_src = chunk_s
        tile_max = max_src[0]
        for t in max_src[1:]:
            tile_max = jnp.maximum(tile_max, t)

        m_prev = m_scr[...]
        m_new = jnp.maximum(m_prev, tile_max)
        alpha = jnp.exp(m_prev - m_new)

        sum_exp = jnp.zeros_like(m_new)
        p_acc = jnp.zeros_like(m_new)
        c_acc = jnp.zeros_like(m_new)
        for c in range(nchunks):
            shifted = chunk_s[c] - m_new
            if masked:
                # select-before-exp: masked entries become exp(_NEG_BIG) == 0 even
                # when the whole lane is masked (m_new stuck at the sentinel).
                shifted = jnp.where(chunk_msk[c], shifted, _NEG_BIG)
            sum_exp = sum_exp + jnp.exp(shifted)
            p_acc = p_acc + chunk_pos[c] * chunk_s[c]
            c_acc = c_acc + chunk_pos[c]

        m_scr[...] = m_new
        s_scr[...] = alpha * s_scr[...] + sum_exp
        p_scr[...] = p_scr[...] + p_acc
        c_scr[...] = c_scr[...] + c_acc

    # Mask work only on tiles that need it: the diagonal (self-contrast) and, when
    # N is padded, the last column tile.  Everything else takes the cheap path.
    needs_mask = i == j
    if has_pad:
        needs_mask = jnp.logical_or(needs_mask, j == nj - 1)

    @pl.when(needs_mask)
    def _masked():
        _accumulate(masked=True)

    @pl.when(jnp.logical_not(needs_mask))
    def _fast():
        _accumulate(masked=False)

    @pl.when(j == nj - 1)
    def _finish():
        # blockwise LSE combine + the only cross-lane reductions, once per row tile
        m = m_scr[...]
        row_max = jnp.max(m, axis=1, keepdims=True)
        s_tot = jnp.sum(jnp.exp(m - row_max) * s_scr[...], axis=1, keepdims=True)
        lse = row_max + jnp.log(s_tot)                   # log sum exp(logits) (masked)
        p_tot = jnp.sum(p_scr[...], axis=1, keepdims=True)
        c_tot = jnp.sum(c_scr[...], axis=1, keepdims=True)
        # sum(mask*log_prob) = P - C*lse ; mean = .../C  (C==0 -> NaN, as in PyTorch;
        # exact divide: this runs once per row tile, approx reciprocal buys nothing)
        out_ref[...] = (-scale) * (p_tot - c_tot * lse) / c_tot


def supcon_loss(features, labels=None, mask=None, *,
                temperature=0.07, base_temperature=0.07,
                contrast_mode="all", block=256, feature_dtype=jnp.bfloat16,
                fc_vmem_resident=None):
    """Pallas TPU implementation of SupConLoss.forward (contrast_mode='all')."""
    features = jnp.asarray(features)
    if features.ndim < 3:
        raise ValueError("`features` needs to be [bsz, n_views, ...]")
    if features.ndim > 3:
        features = features.reshape(features.shape[0], features.shape[1], -1)
    if contrast_mode != "all":
        # TODO(synk): contrast_mode='one' (anchor = first view only) not implemented.
        raise NotImplementedError("only contrast_mode='all' is implemented")

    bsz, n_views, dim = features.shape
    N = bsz * n_views

    if labels is not None and mask is not None:
        raise ValueError("Cannot define both `labels` and `mask`")
    if mask is not None:
        # TODO(synk): arbitrary (possibly asymmetric) bsz x bsz mask argument is not
        # supported by the label-compare fast path of the tiled kernel.
        raise NotImplementedError("explicit `mask` argument not supported")
    if labels is None:
        labels = jnp.arange(bsz, dtype=jnp.int32)    # eye(bsz) mask == label equality
    labels = jnp.asarray(labels).reshape(-1).astype(jnp.int32)
    if labels.shape[0] != bsz:
        raise ValueError("Num of labels does not match num of features")

    # contrast_feature = cat(unbind(features, dim=1), dim=0) -> [N, D], view-major.
    cf = jnp.transpose(features, (1, 0, 2)).reshape(N, dim).astype(jnp.float32)
    # Fold 1/temperature into the features: (a*sqrt(1/t)) . (b*sqrt(1/t)) = (a.b)/t
    cf = cf * (float(1.0 / temperature) ** 0.5)
    lab_full = jnp.tile(labels, (n_views,))                      # [N]

    # Pad to TPU-friendly tiles: lane dim (D) to 128, anchor dim (N) to the tile.
    tile = max(128, min(block, _round_up(N, 128)))
    n_pad = _round_up(N, tile)
    # v7x has 2 TensorCores: give the parallel row axis >= 2 tiles when possible.
    if n_pad // tile < 2 and n_pad >= 256:
        tile = _round_up(n_pad // 2, 128)
        n_pad = _round_up(N, tile)
    d_pad = _round_up(dim, 128)
    has_pad = n_pad != N

    cf_p = jnp.zeros((n_pad, d_pad), dtype=feature_dtype)
    cf_p = cf_p.at[:N, :dim].set(cf.astype(feature_dtype))
    # pad label value is irrelevant: padded columns only appear in the (masked)
    # last column tile and are excluded there; padded rows are sliced off below.
    lab_p = jnp.full((n_pad,), -1, dtype=jnp.int32).at[:N].set(lab_full)
    lab_row = lab_p.reshape(n_pad, 1)
    lab_col = lab_p.reshape(1, n_pad)

    feat_b = jnp.dtype(feature_dtype).itemsize
    fc_bytes_full = n_pad * d_pad * feat_b
    if fc_vmem_resident is None:
        fc_resident = fc_bytes_full <= (8 << 20)   # conservative for v7x's 64 MiB VMEM
    else:
        fc_resident = bool(fc_vmem_resident)

    # rough VMEM budget (double-buffered inputs + scratch + logits working set)
    # TODO(synk): per-generation tile sizing (v6e: tile>=512 for large D; v5e:
    # Buffered(3) on the fc stream) is not auto-selected here.
    fr_bytes = 2 * tile * d_pad * feat_b
    fc_bytes = 2 * (fc_bytes_full if fc_resident else tile * d_pad * feat_b)
    scratch_bytes = 4 * tile * 128 * 4
    work_bytes = 4 * tile * tile * 4
    vmem_limit = int(min(max(fr_bytes + fc_bytes + scratch_bytes + work_bytes
                             + (8 << 20), 32 << 20), 64 << 20))

    if fc_resident:
        fc_spec = pl.BlockSpec((n_pad, d_pad), lambda i, j: (0, 0))  # loaded once
    else:
        fc_spec = pl.BlockSpec((tile, d_pad), lambda i, j: (j, 0))

    kernel = functools.partial(
        _supcon_kernel,
        scale=float(temperature / base_temperature),
        n_valid=N, block_m=tile, block_n=tile,
        fc_resident=fc_resident, has_pad=has_pad)

    per_anchor = pl.pallas_call(
        kernel,
        out_shape=jax.ShapeDtypeStruct((n_pad, 1), jnp.float32),
        grid_spec=pltpu.PrefetchScalarGridSpec(
            num_scalar_prefetch=0,
            grid=(n_pad // tile, n_pad // tile),
            in_specs=[
                pl.BlockSpec((tile, 1), lambda i, j: (i, 0)),        # row labels
                pl.BlockSpec((1, tile), lambda i, j: (0, j)),        # col labels
                pl.BlockSpec((tile, d_pad), lambda i, j: (i, 0)),    # anchor rows
                fc_spec,                                             # contrast cols
            ],
            out_specs=pl.BlockSpec((tile, 1), lambda i, j: (i, 0)),
            scratch_shapes=[pltpu.VMEM((tile, 128), jnp.float32)] * 4,  # m, s, p, c
        ),
        compiler_params=pltpu.CompilerParams(
            dimension_semantics=("parallel", "arbitrary"),
            vmem_limit_bytes=vmem_limit),
    )(lab_row, lab_col, cf_p, cf_p)

    # loss.view(anchor_count, batch_size).mean() == mean over all N anchors.
    return jnp.mean(per_anchor[:N, 0])


def _reference_supcon(features, labels, temperature=0.07, base_temperature=0.07,
                      quantize_like_kernel=False):
    """Pure-JAX reference mirroring the PyTorch code (validation only)."""
    bsz, n_views, dim = features.shape
    N = bsz * n_views
    cf = jnp.transpose(features, (1, 0, 2)).reshape(N, dim).astype(jnp.float32)
    if quantize_like_kernel:
        cf = (cf * (float(1.0 / temperature) ** 0.5)).astype(jnp.bfloat16)
        cf = cf.astype(jnp.float32)
        logits = cf @ cf.T                     # 1/temp already folded in
    else:
        logits = (cf @ cf.T) / temperature
    lab_full = jnp.tile(labels, (n_views,))
    mask = (lab_full[:, None] == lab_full[None, :]).astype(jnp.float32)
    logits = logits - jnp.max(logits, axis=1, keepdims=True)
    logits_mask = 1.0 - jnp.eye(N, dtype=jnp.float32)
    mask = mask * logits_mask
    exp_logits = jnp.exp(logits) * logits_mask
    log_prob = logits - jnp.log(exp_logits.sum(1, keepdims=True))
    mlpp = (mask * log_prob).sum(1) / mask.sum(1)
    return jnp.mean(-(temperature / base_temperature) * mlpp)


if __name__ == "__main__":
    key = jax.random.PRNGKey(0)
    k1, k2, k3, k4 = jax.random.split(key, 4)

    # --- case 1: small shape consistent with the module -----------------------
    bsz, n_views, dim = 8, 2, 32
    feats = jax.random.normal(k1, (bsz, n_views, dim), dtype=jnp.float32)
    feats = feats / jnp.linalg.norm(feats, axis=-1, keepdims=True)
    labels = jax.random.randint(k2, (bsz,), 0, 4, dtype=jnp.int32)

    loss = supcon_loss(feats, labels=labels, temperature=0.1, base_temperature=0.07)
    loss = jax.block_until_ready(loss)
    ref_q = _reference_supcon(feats, labels, 0.1, 0.07, quantize_like_kernel=True)
    ref_f = _reference_supcon(feats, labels, 0.1, 0.07, quantize_like_kernel=False)
    assert np.allclose(np.asarray(loss), np.asarray(ref_q), rtol=2e-2, atol=2e-2), (loss, ref_q)
    assert np.allclose(np.asarray(loss), np.asarray(ref_f), rtol=6e-2, atol=6e-2), (loss, ref_f)

    # --- case 2: multi-tile grid (fast + masked paths), N/D padding, online LSE
    bsz2, n_views2, dim2 = 160, 2, 72        # N = 320 -> padded to 512, grid (2, 2)
    feats2 = jax.random.normal(k3, (bsz2, n_views2, dim2), dtype=jnp.float32)
    feats2 = feats2 / jnp.linalg.norm(feats2, axis=-1, keepdims=True)
    labels2 = jax.random.randint(k4, (bsz2,), 0, 6, dtype=jnp.int32)
    ref2 = _reference_supcon(feats2, labels2, 0.1, 0.07, quantize_like_kernel=True)

    loss2 = jax.block_until_ready(
        supcon_loss(feats2, labels=labels2, temperature=0.1, base_temperature=0.07))
    assert np.allclose(np.asarray(loss2), np.asarray(ref2), rtol=2e-2, atol=2e-2), (loss2, ref2)

    # same case with the streamed (non-resident) contrast-feature path
    loss2b = jax.block_until_ready(
        supcon_loss(feats2, labels=labels2, temperature=0.1, base_temperature=0.07,
                    fc_vmem_resident=False))
    assert np.allclose(np.asarray(loss2b), np.asarray(ref2), rtol=2e-2, atol=2e-2), (loss2b, ref2)

    # --- case 3: unsupervised (SimCLR) path: labels=None, mask=None ------------
    loss3 = jax.block_until_ready(
        supcon_loss(feats, temperature=0.1, base_temperature=0.07))
    ref3 = _reference_supcon(feats, jnp.arange(bsz, dtype=jnp.int32), 0.1, 0.07,
                             quantize_like_kernel=True)
    assert np.allclose(np.asarray(loss3), np.asarray(ref3), rtol=2e-2, atol=2e-2), (loss3, ref3)

    print("KERNEL_OK")
</pallas_src>

<mosaic_0001>
module attributes {stable_mosaic.version = 11 : i64} {
  func.func @_supcon_kernel(%arg0: i32, %arg1: i32, %arg2: memref<128x1xi32, #tpu.memory_space<vmem>>, %arg3: memref<1x128xi32, #tpu.memory_space<vmem>>, %arg4: memref<128x128xbf16, #tpu.memory_space<vmem>>, %arg5: memref<128x128xbf16, #tpu.memory_space<vmem>>, %arg6: memref<128x1xf32, #tpu.memory_space<vmem>>, %arg7: memref<128x128xf32, #tpu.memory_space<vmem>>, %arg8: memref<128x128xf32, #tpu.memory_space<vmem>>, %arg9: memref<128x128xf32, #tpu.memory_space<vmem>>, %arg10: memref<128x128xf32, #tpu.memory_space<vmem>>) attributes {dimension_semantics = [#tpu.dimension_semantics<parallel>, #tpu.dimension_semantics<arbitrary>], iteration_bounds = array<i64: 1, 1>, scalar_prefetch = 0 : i64, scratch_operands = 4 : i64, tpu.core_type = #tpu.core_type<tc>, window_params = [{transform_indices = @transform_0, window_bounds = array<i64: 128, 1>}, {transform_indices = @transform_1, window_bounds = array<i64: 1, 128>}, {transform_indices = @transform_2, window_bounds = array<i64: 128, 128>}, {pipeline_mode = #tpu.pipeline_mode<synchronous>, transform_indices = @transform_3, window_bounds = array<i64: 128, 128>}, {transform_indices = @transform_4, window_bounds = array<i64: 128, 1>}]} {
    %c0_i32 = arith.constant 0 : i32
    %0 = arith.cmpi eq, %arg1, %c0_i32 : i32
    %1 = arith.extui %0 : i1 to i32
    %c0_i32_0 = arith.constant 0 : i32
    %2 = arith.cmpi ne, %1, %c0_i32_0 : i32
    scf.if %2 {
      %cst_12 = arith.constant -1.000000e+30 : f32
      %22 = vector.broadcast %cst_12 : f32 to vector<128x128xf32>
      %c0_13 = arith.constant 0 : index
      %c0_14 = arith.constant 0 : index
      %23 = vector.load %arg7[%c0_13, %c0_14] : memref<128x128xf32, #tpu.memory_space<vmem>>, vector<128x128xf32>
      tpu.vector_store %arg7[%c0_13, %c0_14], %22 {strides = array<i32>} : memref<128x128xf32, #tpu.memory_space<vmem>>, vector<128x128xf32>,
      %cst_15 = arith.constant 0.000000e+00 : f32
      %24 = vector.broadcast %cst_15 : f32 to vector<128x128xf32>
      %c0_16 = arith.constant 0 : index
      %c0_17 = arith.constant 0 : index
      %25 = vector.load %arg8[%c0_16, %c0_17] : memref<128x128xf32, #tpu.memory_space<vmem>>, vector<128x128xf32>
      tpu.vector_store %arg8[%c0_16, %c0_17], %24 {strides = array<i32>} : memref<128x128xf32, #tpu.memory_space<vmem>>, vector<128x128xf32>,
      %cst_18 = arith.constant 0.000000e+00 : f32
      %26 = vector.broadcast %cst_18 : f32 to vector<128x128xf32>
      %c0_19 = arith.constant 0 : index
      %c0_20 = arith.constant 0 : index
      %27 = vector.load %arg9[%c0_19, %c0_20] : memref<128x128xf32, #tpu.memory_space<vmem>>, vector<128x128xf32>
      tpu.vector_store %arg9[%c0_19, %c0_20], %26 {strides = array<i32>} : memref<128x128xf32, #tpu.memory_space<vmem>>, vector<128x128xf32>,
      %cst_21 = arith.constant 0.000000e+00 : f32
      %28 = vector.broadcast %cst_21 : f32 to vector<128x128xf32>
      %c0_22 = arith.constant 0 : index
      %c0_23 = arith.constant 0 : index
      %29 = vector.load %arg10[%c0_22, %c0_23] : memref<128x128xf32, #tpu.memory_space<vmem>>, vector<128x128xf32>
      tpu.vector_store %arg10[%c0_22, %c0_23], %28 {strides = array<i32>} : memref<128x128xf32, #tpu.memory_space<vmem>>, vector<128x128xf32>,
    } else {
    }
    %c128_i32 = arith.constant 128 : i32
    %3 = arith.muli %arg1, %c128_i32 : i32
    %4 = tpu.assume_multiple %3, 128 : i32
    %5 = arith.index_cast %4 : i32 to index
    %c0 = arith.constant 0 : index
    %6 = vector.load %arg5[%5, %c0] : memref<128x128xbf16, #tpu.memory_space<vmem>>, vector<128x128xbf16>
    %c0_1 = arith.constant 0 : index
    %c0_2 = arith.constant 0 : index
    %7 = vector.load %arg4[%c0_1, %c0_2] : memref<128x128xbf16, #tpu.memory_space<vmem>>, vector<128x128xbf16>
    %cst = arith.constant dense<0.000000e+00> : vector<128x128xf32>
    %8 = tpu.matmul %7, %6, %cst {dimension_numbers = #tpu.dot_dimension_numbers<[1], [1], [0], [0], [0, 0, 1, 0], [], []>} : vector<128x128xbf16>, vector<128x128xbf16>, vector<128x128xf32> -> vector<128x128xf32>
    %c0_3 = arith.constant 0 : index
    %c0_4 = arith.constant 0 : index
    %9 = vector.load %arg2[%c0_3, %c0_4] : memref<128x1xi32, #tpu.memory_space<vmem>>, vector<128x1xi32>
    %c0_5 = arith.constant 0 : index
    %c0_6 = arith.constant 0 : index
    %10 = vector.load %arg3[%c0_5, %c0_6] : memref<1x128xi32, #tpu.memory_space<vmem>>, vector<1x128xi32>
    %11 = arith.cmpi eq, %arg0, %arg1 : i32
    %c0_i32_7 = arith.constant 0 : i32
    %12 = arith.cmpi eq, %arg1, %c0_i32_7 : i32
    %13 = arith.ori %11, %12 : i1
    %14 = arith.extui %13 : i1 to i32
    %c0_i32_8 = arith.constant 0 : i32
    %15 = arith.cmpi ne, %14, %c0_i32_8 : i32
    scf.if %15 {
      %c128_i32_12 = arith.constant 128 : i32
      %22 = arith.muli %arg0, %c128_i32_12 : i32
      %23 = tpu.iota {dimensions = array<i32: 0>} : vector<128x1xi32>
      %24 = vector.broadcast %22 : i32 to vector<128x1xi32>
      %25 = arith.addi %24, %23 : vector<128x1xi32>
      %26 = vector.broadcast %9 : vector<128x1xi32> to vector<128x128xi32>
      %27 = vector.broadcast %10 : vector<1x128xi32> to vector<128x128xi32>
      %28 = arith.cmpi eq, %26, %27 : vector<128x128xi32>
      %c128_i32_13 = arith.constant 128 : i32
      %29 = arith.muli %arg1, %c128_i32_13 : i32
      %c0_i32_14 = arith.constant 0 : i32
      %30 = arith.addi %29, %c0_i32_14 : i32
      %31 = tpu.iota {dimensions = array<i32: 1>} : vector<1x128xi32>
      %32 = vector.broadcast %30 : i32 to vector<1x128xi32>
      %33 = arith.addi %32, %31 : vector<1x128xi32>
      %c16_i32 = arith.constant 16 : i32
      %34 = vector.broadcast %c16_i32 : i32 to vector<1x128xi32>
      %35 = arith.cmpi slt, %33, %34 : vector<1x128xi32>
      %36 = vector.broadcast %25 : vector<128x1xi32> to vector<128x128xi32>
      %37 = vector.broadcast %33 : vector<1x128xi32> to vector<128x128xi32>
      %38 = arith.cmpi ne, %36, %37 : vector<128x128xi32>
      %39 = vector.broadcast %35 : vector<1x128xi1> to vector<128x128xi1>
      %40 = arith.andi %39, %38 : vector<128x128xi1>
      %41 = arith.andi %28, %40 : vector<128x128xi1>
      %42 = arith.extui %41 : vector<128x128xi1> to vector<128x128xi32>
      %43 = arith.sitofp %42 : vector<128x128xi32> to vector<128x128xf32>
      %cst_15 = arith.constant -1.000000e+30 : f32
      %44 = vector.broadcast %cst_15 : f32 to vector<128x128xf32>
      %45 = arith.select %40, %8, %44 : vector<128x128xi1>, vector<128x128xf32>
      %c0_16 = arith.constant 0 : index
      %c0_17 = arith.constant 0 : index
      %46 = vector.load %arg7[%c0_16, %c0_17] : memref<128x128xf32, #tpu.memory_space<vmem>>, vector<128x128xf32>
      %47 = arith.maximumf %46, %45 : vector<128x128xf32>
      %48 = arith.subf %46, %47 : vector<128x128xf32>
      %49 = math.exp %48 : vector<128x128xf32>
      %cst_18 = arith.constant 0.000000e+00 : f32
      %50 = vector.broadcast %cst_18 : f32 to vector<128x128xf32>
      %cst_19 = arith.constant 0.000000e+00 : f32
      %51 = vector.broadcast %cst_19 : f32 to vector<128x128xf32>
      %cst_20 = arith.constant 0.000000e+00 : f32
      %52 = vector.broadcast %cst_20 : f32 to vector<128x128xf32>
      %53 = arith.subf %8, %47 : vector<128x128xf32>
      %cst_21 = arith.constant -1.000000e+30 : f32
      %54 = vector.broadcast %cst_21 : f32 to vector<128x128xf32>
      %55 = arith.select %40, %53, %54 : vector<128x128xi1>, vector<128x128xf32>
      %56 = math.exp %55 : vector<128x128xf32>
      %57 = arith.addf %50, %56 : vector<128x128xf32>
      %58 = arith.mulf %43, %8 : vector<128x128xf32>
      %59 = arith.addf %51, %58 : vector<128x128xf32>
      %60 = arith.addf %52, %43 : vector<128x128xf32>
      %c0_22 = arith.constant 0 : index
      %c0_23 = arith.constant 0 : index
      %61 = vector.load %arg7[%c0_22, %c0_23] : memref<128x128xf32, #tpu.memory_space<vmem>>, vector<128x128xf32>
      tpu.vector_store %arg7[%c0_22, %c0_23], %47 {strides = array<i32>} : memref<128x128xf32, #tpu.memory_space<vmem>>, vector<128x128xf32>,
      %c0_24 = arith.constant 0 : index
      %c0_25 = arith.constant 0 : index
      %62 = vector.load %arg8[%c0_24, %c0_25] : memref<128x128xf32, #tpu.memory_space<vmem>>, vector<128x128xf32>
      %63 = arith.mulf %49, %62 : vector<128x128xf32>
      %64 = arith.addf %63, %57 : vector<128x128xf32>
      %c0_26 = arith.constant 0 : index
      %c0_27 = arith.constant 0 : index
      %65 = vector.load %arg8[%c0_26, %c0_27] : memref<128x128xf32, #tpu.memory_space<vmem>>, vector<128x128xf32>
      tpu.vector_store %arg8[%c0_26, %c0_27], %64 {strides = array<i32>} : memref<128x128xf32, #tpu.memory_space<vmem>>, vector<128x128xf32>,
      %c0_28 = arith.constant 0 : index
      %c0_29 = arith.constant 0 : index
      %66 = vector.load %arg9[%c0_28, %c0_29] : memref<128x128xf32, #tpu.memory_space<vmem>>, vector<128x128xf32>
      %67 = arith.addf %66, %59 : vector<128x128xf32>
      %c0_30 = arith.constant 0 : index
      %c0_31 = arith.constant 0 : index
      %68 = vector.load %arg9[%c0_30, %c0_31] : memref<128x128xf32, #tpu.memory_space<vmem>>, vector<128x128xf32>
      tpu.vector_store %arg9[%c0_30, %c0_31], %67 {strides = array<i32>} : memref<128x128xf32, #tpu.memory_space<vmem>>, vector<128x128xf32>,
      %c0_32 = arith.constant 0 : index
      %c0_33 = arith.constant 0 : index
      %69 = vector.load %arg10[%c0_32, %c0_33] : memref<128x128xf32, #tpu.memory_space<vmem>>, vector<128x128xf32>
      %70 = arith.addf %69, %60 : vector<128x128xf32>
      %c0_34 = arith.constant 0 : index
      %c0_35 = arith.constant 0 : index
      %71 = vector.load %arg10[%c0_34, %c0_35] : memref<128x128xf32, #tpu.memory_space<vmem>>, vector<128x128xf32>
      tpu.vector_store %arg10[%c0_34, %c0_35], %70 {strides = array<i32>} : memref<128x128xf32, #tpu.memory_space<vmem>>, vector<128x128xf32>,
    } else {
    }
    %true = arith.constant true
    %16 = arith.xori %13, %true : i1
    %17 = arith.extui %16 : i1 to i32
    %c0_i32_9 = arith.constant 0 : i32
    %18 = arith.cmpi ne, %17, %c0_i32_9 : i32
    scf.if %18 {
      %22 = vector.broadcast %9 : vector<128x1xi32> to vector<128x128xi32>
      %23 = vector.broadcast %10 : vector<1x128xi32> to vector<128x128xi32>
      %24 = arith.cmpi eq, %22, %23 : vector<128x128xi32>
      %25 = arith.extui %24 : vector<128x128xi1> to vector<128x128xi32>
      %26 = arith.sitofp %25 : vector<128x128xi32> to vector<128x128xf32>
      %c0_12 = arith.constant 0 : index
      %c0_13 = arith.constant 0 : index
      %27 = vector.load %arg7[%c0_12, %c0_13] : memref<128x128xf32, #tpu.memory_space<vmem>>, vector<128x128xf32>
      %28 = arith.maximumf %27, %8 : vector<128x128xf32>
      %29 = arith.subf %27, %28 : vector<128x128xf32>
      %30 = math.exp %29 : vector<128x128xf32>
      %cst_14 = arith.constant 0.000000e+00 : f32
      %31 = vector.broadcast %cst_14 : f32 to vector<128x128xf32>
      %cst_15 = arith.constant 0.000000e+00 : f32
      %32 = vector.broadcast %cst_15 : f32 to vector<128x128xf32>
      %cst_16 = arith.constant 0.000000e+00 : f32
      %33 = vector.broadcast %cst_16 : f32 to vector<128x128xf32>
      %34 = arith.subf %8, %28 : vector<128x128xf32>
      %35 = math.exp %34 : vector<128x128xf32>
      %36 = arith.addf %31, %35 : vector<128x128xf32>
      %37 = arith.mulf %26, %8 : vector<128x128xf32>
      %38 = arith.addf %32, %37 : vector<128x128xf32>
      %39 = arith.addf %33, %26 : vector<128x128xf32>
      %c0_17 = arith.constant 0 : index
      %c0_18 = arith.constant 0 : index
      %40 = vector.load %arg7[%c0_17, %c0_18] : memref<128x128xf32, #tpu.memory_space<vmem>>, vector<128x128xf32>
      tpu.vector_store %arg7[%c0_17, %c0_18], %28 {strides = array<i32>} : memref<128x128xf32, #tpu.memory_space<vmem>>, vector<128x128xf32>,
      %c0_19 = arith.constant 0 : index
      %c0_20 = arith.constant 0 : index
      %41 = vector.load %arg8[%c0_19, %c0_20] : memref<128x128xf32, #tpu.memory_space<vmem>>, vector<128x128xf32>
      %42 = arith.mulf %30, %41 : vector<128x128xf32>
      %43 = arith.addf %42, %36 : vector<128x128xf32>
      %c0_21 = arith.constant 0 : index
      %c0_22 = arith.constant 0 : index
      %44 = vector.load %arg8[%c0_21, %c0_22] : memref<128x128xf32, #tpu.memory_space<vmem>>, vector<128x128xf32>
      tpu.vector_store %arg8[%c0_21, %c0_22], %43 {strides = array<i32>} : memref<128x128xf32, #tpu.memory_space<vmem>>, vector<128x128xf32>,
      %c0_23 = arith.constant 0 : index
      %c0_24 = arith.constant 0 : index
      %45 = vector.load %arg9[%c0_23, %c0_24] : memref<128x128xf32, #tpu.memory_space<vmem>>, vector<128x128xf32>
      %46 = arith.addf %45, %38 : vector<128x128xf32>
      %c0_25 = arith.constant 0 : index
      %c0_26 = arith.constant 0 : index
      %47 = vector.load %arg9[%c0_25, %c0_26] : memref<128x128xf32, #tpu.memory_space<vmem>>, vector<128x128xf32>
      tpu.vector_store %arg9[%c0_25, %c0_26], %46 {strides = array<i32>} : memref<128x128xf32, #tpu.memory_space<vmem>>, vector<128x128xf32>,
      %c0_27 = arith.constant 0 : index
      %c0_28 = arith.constant 0 : index
      %48 = vector.load %arg10[%c0_27, %c0_28] : memref<128x128xf32, #tpu.memory_space<vmem>>, vector<128x128xf32>
      %49 = arith.addf %48, %39 : vector<128x128xf32>
      %c0_29 = arith.constant 0 : index
      %c0_30 = arith.constant 0 : index
      %50 = vector.load %arg10[%c0_29, %c0_30] : memref<128x128xf32, #tpu.memory_space<vmem>>, vector<128x128xf32>
      tpu.vector_store %arg10[%c0_29, %c0_30], %49 {strides = array<i32>} : memref<128x128xf32, #tpu.memory_space<vmem>>, vector<128x128xf32>,
    } else {
    }
    %c0_i32_10 = arith.constant 0 : i32
    %19 = arith.cmpi eq, %arg1, %c0_i32_10 : i32
    %20 = arith.extui %19 : i1 to i32
    %c0_i32_11 = arith.constant 0 : i32
    %21 = arith.cmpi ne, %20, %c0_i32_11 : i32
    scf.if %21 {
      %c0_12 = arith.constant 0 : index
      %c0_13 = arith.constant 0 : index
      %22 = vector.load %arg7[%c0_12, %c0_13] : memref<128x128xf32, #tpu.memory_space<vmem>>, vector<128x128xf32>
      %cst_14 = arith.constant dense<0xFF800000> : vector<128xf32>
      %23 = vector.multi_reduction <maximumf>, %22, %cst_14 [1] : vector<128x128xf32> to vector<128xf32>
      %24 = vector.shape_cast %23 : vector<128xf32> to vector<128x1xf32>
      %25 = vector.broadcast %24 : vector<128x1xf32> to vector<128x128xf32>
      %26 = arith.subf %22, %25 : vector<128x128xf32>
      %27 = math.exp %26 : vector<128x128xf32>
      %c0_15 = arith.constant 0 : index
      %c0_16 = arith.constant 0 : index
      %28 = vector.load %arg8[%c0_15, %c0_16] : memref<128x128xf32, #tpu.memory_space<vmem>>, vector<128x128xf32>
      %29 = arith.mulf %27, %28 : vector<128x128xf32>
      %cst_17 = arith.constant dense<0.000000e+00> : vector<128xf32>
      %30 = vector.multi_reduction <add>, %29, %cst_17 [1] : vector<128x128xf32> to vector<128xf32>
      %31 = vector.shape_cast %30 : vector<128xf32> to vector<128x1xf32>
      %32 = math.log %31 : vector<128x1xf32>
      %33 = arith.addf %24, %32 : vector<128x1xf32>
      %c0_18 = arith.constant 0 : index
      %c0_19 = arith.constant 0 : index
      %34 = vector.load %arg9[%c0_18, %c0_19] : memref<128x128xf32, #tpu.memory_space<vmem>>, vector<128x128xf32>
      %cst_20 = arith.constant dense<0.000000e+00> : vector<128xf32>
      %35 = vector.multi_reduction <add>, %34, %cst_20 [1] : vector<128x128xf32> to vector<128xf32>
      %36 = vector.shape_cast %35 : vector<128xf32> to vector<128x1xf32>
      %c0_21 = arith.constant 0 : index
      %c0_22 = arith.constant 0 : index
      %37 = vector.load %arg10[%c0_21, %c0_22] : memref<128x128xf32, #tpu.memory_space<vmem>>, vector<128x128xf32>
      %cst_23 = arith.constant dense<0.000000e+00> : vector<128xf32>
      %38 = vector.multi_reduction <add>, %37, %cst_23 [1] : vector<128x128xf32> to vector<128xf32>
      %39 = vector.shape_cast %38 : vector<128xf32> to vector<128x1xf32>
      %40 = arith.mulf %39, %33 : vector<128x1xf32>
      %41 = arith.subf %36, %40 : vector<128x1xf32>
      %cst_24 = arith.constant -1.42857146 : f32
      %42 = vector.broadcast %cst_24 : f32 to vector<128x1xf32>
      %43 = arith.mulf %42, %41 : vector<128x1xf32>
      %44 = arith.divf %43, %39 : vector<128x1xf32>
      %c0_25 = arith.constant 0 : index
      %c0_26 = arith.constant 0 : index
      %45 = vector.load %arg6[%c0_25, %c0_26] : memref<128x1xf32, #tpu.memory_space<vmem>>, vector<128x1xf32>
      tpu.vector_store %arg6[%c0_25, %c0_26], %44 {strides = array<i32>} : memref<128x1xf32, #tpu.memory_space<vmem>>, vector<128x1xf32>,
    } else {
    }
    return
  }
  func.func @transform_0(%arg0: i32, %arg1: i32) -> (i32, i32) {
    %c0_i32 = arith.constant 0 : i32
    %c0_i32_0 = arith.constant 0 : i32
    return %arg0, %c0_i32 : i32, i32
  }
  func.func @transform_1(%arg0: i32, %arg1: i32) -> (i32, i32) {
    %c0_i32 = arith.constant 0 : i32
    %c0_i32_0 = arith.constant 0 : i32
    return %c0_i32, %arg1 : i32, i32
  }
  func.func @transform_2(%arg0: i32, %arg1: i32) -> (i32, i32) {
    %c0_i32 = arith.constant 0 : i32
    %c0_i32_0 = arith.constant 0 : i32
    return %arg0, %c0_i32 : i32, i32
  }
  func.func @transform_3(%arg0: i32, %arg1: i32) -> (i32, i32) {
    %c0_i32 = arith.constant 0 : i32
    %c0_i32_0 = arith.constant 0 : i32
    %c0_i32_1 = arith.constant 0 : i32
    return %c0_i32, %c0_i32_0 : i32, i32
  }
  func.func @transform_4(%arg0: i32, %arg1: i32) -> (i32, i32) {
    %c0_i32 = arith.constant 0 : i32
    %c0_i32_0 = arith.constant 0 : i32
    return %arg0, %c0_i32 : i32, i32
  }
}

</mosaic_0001>

<bundles_post_ra>
// kernel: tpu_custom_call.1
= control target key start
LH: loop header
LB: loop body
LE: loop exit
PB: predicated region body
PF: predicated region fallthrough
CT: control target
= control target key end

     0   :  { %v2102_v1 = vmov 0   ;;  %v339_v31 = vlaneseq  ;;  %s3009_s3 = inlined_call_operand.vmem [shape: bf16[128,128], index: 3, kind: input, shape index: {}]   ;;  %s3010_s2 = inlined_call_operand.vmem [shape: bf16[128,128], index: 2, kind: input, shape index: {}]   ;;  %s3011_s0 = inlined_call_operand.vmem [shape: s32[128,1], index: 0, kind: input, shape index: {}]   ;;  %s3012_s1 = inlined_call_operand.vmem [shape: s32[1,128], index: 1, kind: input, shape index: {}]   ;;  %s3013_s4 = inlined_call_operand.vmem [shape: f32[128,1], index: 4, kind: output, shape index: {}]  }
   0x1   :  { %v1926_v0 = vld [vmem:[%s3009_s3] sm:$0xff]   ;;  %1925 = vset.pattern.permute.xlu1 %v2102_v1  ;;  %1924 = vset.pattern.permute.xlu0 %v2102_v1  ;;  %v1927_v2 = vld [vmem:[%s3009_s3 + $0x8] sm:$0xff]   ;;  %v1928_v3 = vld [vmem:[%s3009_s3 + $0x10] sm:$0xff]  }
   0x2   :  { %1874 = vmatprep.subr.bf16.mxu0 %v1926_v0  ;;  %1906 = vmatprep.subr.bf16.mxu1 %v1926_v0  ;;  %v1934_v4 = vld [vmem:[%s3010_s2] sm:$0xff]   ;;  %v1929_v6 = vld [vmem:[%s3009_s3 + $0x18] sm:$0xff]   ;;  %v318_v7 = vld [vmem:[%s3011_s0 + $0x10] sm:$0xff]  ;;  %v2219_v32 = vshrl.u32 %v339_v31, 7  ;;  %v2223_v35 = vand.u32 127, %v339_v31 }
   0x3   :  { %1875 = vmatpush3.bf16.xpose.msra.mxu0 %v1926_v0  ;;  %1914 = vmatpush3.bf16.xpose.msra.mxu1 %v1926_v0  ;;  %v1935_v5 = vld [vmem:[%s3010_s2 + $0x20] sm:$0xff]   ;;  %v319_v9 = vld [vmem:[%s3011_s0 + $0x18] sm:$0xff]  ;;  %v317_v10 = vld [vmem:[%s3011_s0 + $0x8] sm:$0xff]  ;;  %v3065_v0 = vmov 0 }
   0x4   :  { %1876 = vmatprep.subr.bf16.mxu0 %v1927_v2  ;;  %1907 = vmatprep.subr.bf16.mxu1 %v1927_v2  ;;  %v316_v8 = vld [vmem:[%s3011_s0] sm:$0xff]  ;;  %v321_v11 = vld [vmem:[%s3011_s0 + $0x28] sm:$0xff]  ;;  %v322_v14 = vld [vmem:[%s3011_s0 + $0x30] sm:$0xff]  ;;  %v350_v33 = vadd.s32 80, %v2219_v32  ;;  %v342_v34 = vadd.s32 16, %v2219_v32  ;;  %v348_v36 = vadd.s32 64, %v2219_v32  ;;  %vm446_vm6 = vcmp.ne.s32.totalorder %v2219_v32, %v2223_v35 }
   0x5   :  { %1890 = vmatprep.mubr.bf16.mxu0 %v1934_v4  ;;  %1898 = vmatprep.mubr.bf16.mxu1 %v1935_v5  ;;  %v320_v12 = vld [vmem:[%s3011_s0 + $0x20] sm:$0xff]  ;;  %v323_v15 = vld [vmem:[%s3011_s0 + $0x38] sm:$0xff]  ;;  %v326_v17 = vld [vmem:[%s3011_s0 + $0x50] sm:$0xff]  ;;  %vm445_vm1 = vcmp.lt.s32.totalorder %v2223_v35, 16  ;;  %v343_v38 = vadd.s32 24, %v2219_v32  ;;  %v341_v40 = vadd.s32 8, %v2219_v32 }
   0x6   :  { %380 = vperm.xlu1 %1925, %v318_v7   ;;  %374 = vperm.xlu0 %1924, %v316_v8   ;;  %v1930_v13 = vld [vmem:[%s3009_s3 + $0x20] sm:$0xff]   ;;  %v1931_v18 = vld [vmem:[%s3009_s3 + $0x28] sm:$0xff]   ;;  %v327_v21 = vld [vmem:[%s3011_s0 + $0x58] sm:$0xff]  ;;  %vm456_vm0 = vcmp.ne.s32.totalorder %v350_v33, %v2223_v35  ;;  %vm448_vm2 = vcmp.ne.s32.totalorder %v342_v34, %v2223_v35  ;;  %vm454_vm3 = vcmp.ne.s32.totalorder %v348_v36, %v2223_v35  ;;  %v351_v44 = vadd.s32 88, %v2219_v32 }
   0x7   :  { %v324_v16 = vld [vmem:[%s3011_s0 + $0x40] sm:$0xff]  ;;  %v325_v19 = vld [vmem:[%s3011_s0 + $0x48] sm:$0xff]  ;;  %v1932_v22 = vld [vmem:[%s3009_s3 + $0x30] sm:$0xff]   ;;  %v346_v45 = vadd.s32 48, %v2219_v32  ;;  %vm449_vm9 = vcmp.ne.s32.totalorder %v343_v38, %v2223_v35  ;;  %vm447_vm10 = vcmp.ne.s32.totalorder %v341_v40, %v2223_v35  ;;  %v349_v61 = vadd.s32 72, %v2219_v32 }
   0x8   :  { %v328_v20 = vld [vmem:[%s3011_s0 + $0x60] sm:$0xff]  ;;  %v329_v23 = vld [vmem:[%s3011_s0 + $0x68] sm:$0xff]  ;;  %v1933_v24 = vld [vmem:[%s3009_s3 + $0x38] sm:$0xff]   ;;  %vm457_vm11 = vcmp.ne.s32.totalorder %v351_v44, %v2223_v35  ;;  %v354_v4 = vadd.s32 112, %v2219_v32  ;;  %v3069_v5 = vmov 0  ;;  %v347_v8 = vadd.s32 56, %v2219_v32 }
   0x9   :  { %v1936_v25 = vld [vmem:[%s3010_s2 + $0x8] sm:$0xff]   ;;  %v1938_v27 = vld [vmem:[%s3010_s2 + $0x10] sm:$0xff]   ;;  %v1939_v29 = vld [vmem:[%s3010_s2 + $0x18] sm:$0xff]   ;;  %vm452_vm13 = vcmp.ne.s32.totalorder %v346_v45, %v2223_v35  ;;  %v345_v36 = vadd.s32 40, %v2219_v32 }
   0xa   :  { %383 = vperm.xlu1 %1925, %v319_v9   ;;  %377 = vperm.xlu0 %1924, %v317_v10   ;;  %v1937_v26 = vld [vmem:[%s3010_s2 + $0x28] sm:$0xff]   ;;  %v1940_v28 = vld [vmem:[%s3010_s2 + $0x30] sm:$0xff]   ;;  %v1941_v30 = vld [vmem:[%s3010_s2 + $0x38] sm:$0xff]  }
   0xb   :  { %1877 = vmatpush3.bf16.xpose.msra.mxu0 %v1927_v2  ;;  %1915 = vmatpush3.bf16.xpose.msra.mxu1 %v1927_v2  ;;  %vm2232_vm4 = vmand %vm445_vm1, %vm456_vm0  ;;  %v3067_v2 = vmov 0  ;;  %v2421_v33 = vld [vmem:[%s3012_s1] ss:$0 sm:$0xff] }
   0xc   :  { %1878 = vmatprep.subr.bf16.mxu0 %v1928_v3  ;;  %1908 = vmatprep.subr.bf16.mxu1 %v1928_v3  ;;  %vm2239_vm5 = vmand %vm445_vm1, %vm448_vm2  ;;  %vm455_vm2 = vcmp.ne.s32.totalorder %v349_v61, %v2223_v35  ;;  %v353_v61 = vadd.s32 104, %v2219_v32 }
   0xd   :  { %vm2252_vm7 = vmand %vm445_vm1, %vm454_vm3  ;;  %vm460_vm3 = vcmp.ne.s32.totalorder %v354_v4, %v2223_v35 }
   0xe   :  { %389 = vperm.xlu1 %1925, %v321_v11   ;;  %386 = vperm.xlu0 %1924, %v320_v12   ;;  %vm2274_vm8 = vmand %vm445_vm1, %vm446_vm6 }
   0xf   :  { %vm2301_vm12 = vmand %vm445_vm1, %vm449_vm9 }
  0x10   :  { %vm2313_vm14 = vmand %vm445_vm1, %vm447_vm10  ;;  %vm453_vm10 = vcmp.ne.s32.totalorder %v347_v8, %v2223_v35  ;;  %v3085_v8 = vmov 0 }
  0x11   :  { %v3066_v0 = vsel %vm2313_vm14, 4294967295, %v3065_v0  ;;  %vm2322_vm15 = vmand %vm445_vm1, %vm457_vm11 }
  0x12   :  { %392 = vperm.xlu1 %1925, %v322_v14   ;;  %395 = vperm.xlu0 %1924, %v323_v15   ;;  %v3068_v2 = vsel %vm2322_vm15, 4294967295, %v3067_v2  ;;  %vm2334_vm0 = vmand %vm445_vm1, %vm452_vm13 }
  0x13   :  { %1879 = vmatpush3.bf16.xpose.msra.mxu0 %v1928_v3  ;;  %1916 = vmatpush3.bf16.xpose.msra.mxu1 %v1928_v3  ;;  %v3070_v5 = vsel %vm2334_vm0, 4294967295, %v3069_v5  ;;  %vm2362_vm6 = vmand %vm445_vm1, %vm455_vm2 }
  0x14   :  { %1880 = vmatprep.subr.bf16.mxu0 %v1929_v6  ;;  %1909 = vmatprep.subr.bf16.mxu1 %v1929_v6  ;;  %vm2390_vm11 = vmand %vm445_vm1, %vm460_vm3 }
  0x15   :  { %vm2411_vm2 = vmand %vm445_vm1, %vm453_vm10 }
  0x16   :  { %398 = vperm.xlu1 %1925, %v324_v16   ;;  %404 = vperm.xlu0 %1924, %v326_v17   ;;  %v3071_v16 = vmov 0 }
  0x17   :  { %v3072_v16 = vsel %vm2362_vm6, 4294967295, %v3071_v16 }
  0x1a   :  { %401 = vperm.xlu1 %1925, %v325_v19   ;;  %410 = vperm.xlu0 %1924, %v328_v20   ;;  %v352_v20 = vadd.s32 96, %v2219_v32 }
  0x1b   :  { %1881 = vmatpush3.bf16.xpose.msra.mxu0 %v1929_v6  ;;  %1917 = vmatpush3.bf16.xpose.msra.mxu1 %v1929_v6  ;;  %v344_v6 = vadd.s32 32, %v2219_v32 }
  0x1c   :  { %1882 = vmatprep.subr.bf16.mxu0 %v1930_v13  ;;  %1910 = vmatprep.subr.bf16.mxu1 %v1930_v13  ;;  %vm458_vm3 = vcmp.ne.s32.totalorder %v352_v20, %v2223_v35 }
  0x1d   :  { %vm450_vm9 = vcmp.ne.s32.totalorder %v344_v6, %v2223_v35 }
  0x1e   :  { %407 = vperm.xlu1 %1925, %v327_v21   ;;  %vm2405_vm13 = vmand %vm445_vm1, %vm450_vm9 }
  0x22   :  { %413 = vperm.xlu1 %1925, %v329_v23   ;;  %v355_v23 = vadd.s32 120, %v2219_v32  ;;  %v3032_v32 = vmov 0.0  }
  0x23   :  { %1883 = vmatpush3.bf16.xpose.msra.mxu0 %v1930_v13  ;;  %1918 = vmatpush3.bf16.xpose.msra.mxu1 %v1930_v13 }
  0x24   :  { %1884 = vmatprep.subr.bf16.mxu0 %v1931_v18  ;;  %1911 = vmatprep.subr.bf16.mxu1 %v1931_v18  ;;  %vm461_vm9 = vcmp.ne.s32.totalorder %v355_v23, %v2223_v35 }
  0x2b   :  { %1885 = vmatpush3.bf16.xpose.msra.mxu0 %v1931_v18  ;;  %1919 = vmatpush3.bf16.xpose.msra.mxu1 %v1931_v18 }
  0x2c   :  { %1886 = vmatprep.subr.bf16.mxu0 %v1932_v22  ;;  %1912 = vmatprep.subr.bf16.mxu1 %v1932_v22 }
  0x33   :  { %1887 = vmatpush3.bf16.xpose.msra.mxu0 %v1932_v22  ;;  %1920 = vmatpush3.bf16.xpose.msra.mxu1 %v1932_v22 }
  0x34   :  { %1888 = vmatprep.subr.bf16.mxu0 %v1933_v24  ;;  %1913 = vmatprep.subr.bf16.mxu1 %v1933_v24 }
  0x3b   :  { %1889 = vmatpush3.bf16.xpose.msra.mxu0 %v1933_v24  ;;  %1921 = vmatpush3.bf16.xpose.msra.mxu1 %v1933_v24 }
  0x42   :  { %1891 = vmatmul.mubr.bf16.vlgmr.msra.gmra.mrb[0].mxu0 %v1936_v25  ;;  %1899 = vmatmul.mubr.bf16.vlgmr.msra.gmra.mrb[0].mxu1 %v1937_v26  ;;  %v3073_v26 = vmov 0 }
  0x43   :  { %1894 = vmatprep.mubr.bf16.mxu0 %v1938_v27  ;;  %1902 = vmatprep.mubr.bf16.mxu1 %v1940_v28  ;;  %v3074_v26 = vsel %vm2390_vm11, 4294967295, %v3073_v26 }
  0x4a   :  { %1895 = vmatmul.mubr.bf16.gmra.mrb[4].mxu0 %v1939_v29  ;;  %1903 = vmatmul.mubr.bf16.gmra.mrb[4].mxu1 %v1941_v30  ;;  %v3076_v30 = vmov 0 }
  0x4b   :  { %v3077_v30 = vsel %vm2405_vm13, 4294967295, %v3076_v30 }
  0x85   :  { %v2297_v59 = vpop.permute.xlu0 %374  ;;  %v2339_v7 = vpop.permute.xlu1 %380 }
  0x89   :  { %v2351_v13 = vpop.permute.xlu0 %377  ;;  %v2396_v28 = vpop.permute.xlu1 %383 }
  0x8d   :  { %v387_v34 = vpop.permute.xlu0 %386 }
  0x8e   :  { %vm429_vm10 = vcmp.eq.s32.totalorder %v387_v34, %v2421_v33 }
 0x115   :  { %v2246_v41 = vpop.f32.mrb[0].mxu0  ;;  %v2248_v42 = vpop.f32.mrb[0].mxu1 }
 0x116   :  { %3055 = vst [vmem:[#allocation6_spill] sm:$0xff] %v2248_v42  ;;  %v530_v46 = vsel %vm2239_vm5, %v2246_v41, -1e+30  ;;  %v538_v47 = vsel %vm2232_vm4, %v2248_v42, -1e+30  ;;  %v2264_v48 = vpop.f32.mrb[1].mxu0 }
 0x117   :  { %v2266_v49 = vpop.f32.mrb[1].mxu1  ;;  %v2268_v50 = vmax.f32 %v530_v46, -1e+30  ;;  %v2270_v51 = vmax.f32 %v538_v47, -1e+30  ;;  %v2285_v55 = vpop.f32.mrb[2].mxu0 }
 0x118   :  { %3058 = vst [vmem:[#allocation7_spill] sm:$0xff] %v2266_v49  ;;  %v528_v53 = vsel %vm2274_vm8, %v2264_v48, -1e+30  ;;  %v536_v54 = vsel %vm2252_vm7, %v2266_v49, -1e+30  ;;  %v2287_v56 = vpop.f32.mrb[2].mxu1 }
 0x119   :  { %3061 = vst [vmem:[#allocation8_spill] sm:$0xff] %v2287_v56  ;;  %v2291_v57 = vpop.f32.mrb[3].mxu0  ;;  %v2293_v58 = vpop.f32.mrb[3].mxu1  ;;  %1438 = vmax.xlane.f32.xlu1 %v2270_v51  ;;  %1422 = vmax.xlane.f32.xlu0 %v2268_v50  ;;  %v2307_v62 = vmax.f32 %v528_v53, -1e+30  ;;  %v3080_v47 = vmov 0 }
 0x11a   :  { %3062 = vst [vmem:[#allocation9_spill] sm:$0xff] %v2293_v58  ;;  %v2309_v63 = vmax.f32 %v536_v54, -1e+30  ;;  %v531_v1 = vsel %vm2301_vm12, %v2285_v55, -1e+30  ;;  %v3083_v53 = vmov 0  ;;  %v390_v54 = vpop.permute.xlu1 %389 }
 0x11b   :  { %v529_v3 = vsel %vm2313_vm14, %v2291_v57, -1e+30  ;;  %v2343_v9 = vmax.f32 %v531_v1, -1e+30  ;;  %v539_v14 = vsel %vm2322_vm15, %v2287_v56, -1e+30  ;;  %vm2441_vm15 = vmand %vm445_vm1, %vm458_vm3 }
 0x11c   :  { %v2345_v10 = vmax.f32 %v529_v3, -1e+30  ;;  %v2382_v24 = vmax.f32 %v539_v14, -1e+30  ;;  %v537_v29 = vsel %vm2362_vm6, %v2293_v58, -1e+30  ;;  %vm451_vm6 = vcmp.ne.s32.totalorder %v345_v36, %v2223_v35  ;;  %vm484_vm3 = vmand %vm429_vm10, %vm2405_vm13 }
 0x11d   :  { %1434 = vmax.xlane.f32.xlu1 %v2309_v63  ;;  %1418 = vmax.xlane.f32.xlu0 %v2307_v62  ;;  %v2347_v11 = vpop.f32.mrb[4].mxu0  ;;  %v2349_v12 = vpop.f32.mrb[4].mxu1  ;;  %v2429_v40 = vmax.f32 %v537_v29, -1e+30  ;;  %v3081_v47 = vsel %vm2441_vm15, 4294967295, %v3080_v47  ;;  %v1829_v14 = vsel %vm484_vm3, 1.0, %v3032_v32  ;;  %vm459_vm10 = vcmp.ne.s32.totalorder %v353_v61, %v2223_v35 }
 0x11e   :  { %v534_v15 = vsel %vm2334_vm0, %v2347_v11, -1e+30  ;;  %v2368_v18 = vpop.f32.mrb[5].mxu0  ;;  %v2373_v19 = vpop.f32.mrb[5].mxu1  ;;  %v542_v38 = vsel %vm2390_vm11, %v2349_v12, -1e+30  ;;  %vm2447_vm11 = vmand %vm445_vm1, %vm461_vm9  ;;  %v625_v39 = vsub.f32 %v2291_v57, %v2345_v10 }
 0x11f   :  { %v2366_v17 = vmax.f32 %v534_v15, -1e+30  ;;  %v2376_v21 = vpop.f32.mrb[6].mxu0  ;;  %v2379_v22 = vpop.f32.mrb[6].mxu1  ;;  %v2431_v44 = vmax.f32 %v542_v38, -1e+30  ;;  %vm2469_vm9 = vmand %vm445_vm1, %vm451_vm6  ;;  %v2485_v34 = vmul.f32 %v1829_v14, %v2368_v18 }
 0x120   :  { %v2384_v25 = vpop.f32.mrb[7].mxu0  ;;  %v2394_v27 = vpop.f32.mrb[7].mxu1  ;;  %v532_v45 = vsel %vm2405_vm13, %v2368_v18, -1e+30  ;;  %v535_v46 = vsel %vm2411_vm2, %v2376_v21, -1e+30  ;;  %vm426_vm13 = vcmp.eq.s32.totalorder %v2351_v13, %v2421_v33 }
 0x121   :  { %1420 = vmax.xlane.f32.xlu1 %v2345_v10  ;;  %1424 = vmax.xlane.f32.xlu0 %v2343_v9  ;;  %3075 = vst [vmem:[#allocation10_spill] sm:$0xff] %v2394_v27  ;;  %3082 = vst [vmem:[#allocation11_spill] sm:$0xff] %v3081_v47  ;;  %v3084_v53 = vsel %vm2447_vm11, 4294967295, %v3083_v53  ;;  %v2457_v1 = vmax.f32 %v532_v45, -1e+30  ;;  %v3086_v8 = vsel %vm2469_vm9, 4294967295, %v3085_v8  ;;  %v393_v23 = vpop.permute.xlu1 %392  ;;  %v632_v47 = vsub.f32 %v2266_v49, %v2309_v63 }
 0x122   :  { %v2459_v3 = vmax.f32 %v535_v46, -1e+30  ;;  %v540_v4 = vsel %vm2441_vm15, %v2373_v19, -1e+30  ;;  %v543_v6 = vsel %vm2447_vm11, %v2379_v22, -1e+30  ;;  %vm431_vm6 = vcmp.eq.s32.totalorder %v393_v23, %v2421_v33  ;;  %vm2490_vm11 = vmand %vm445_vm1, %vm459_vm10 }
 0x123   :  { %v2477_v15 = vmax.f32 %v540_v4, -1e+30  ;;  %v2479_v20 = vmax.f32 %v543_v6, -1e+30  ;;  %v533_v29 = vsel %vm2469_vm9, %v2384_v25, -1e+30  ;;  %vm486_vm3 = vmand %vm431_vm6, %vm2334_vm0  ;;  %vm425_vm1 = vcmp.eq.s32.totalorder %v2297_v59, %v2421_v33 }
 0x124   :  { %3087 = vst [vmem:[#allocation12_spill] sm:$0xff] %v2485_v34  ;;  %v3088_v36 = vmov 0  ;;  %v2496_v38 = vmax.f32 %v533_v29, -1e+30  ;;  %v541_v45 = vsel %vm2490_vm11, %v2394_v27, -1e+30  ;;  %vm480_vm10 = vmand %vm425_vm1, %vm2274_vm8  ;;  %vm427_vm6 = vcmp.eq.s32.totalorder %v2339_v7, %v2421_v33  ;;  %v396_v29 = vpop.permute.xlu0 %395 }
 0x125   :  { %1430 = vmax.xlane.f32.xlu1 %v2366_v17  ;;  %1440 = vmax.xlane.f32.xlu0 %v2382_v24  ;;  %v3089_v36 = vsel %vm2490_vm11, 4294967295, %v3088_v36  ;;  %v2504_v35 = vmax.f32 %v541_v45, -1e+30  ;;  %v1831_v46 = vsel %vm486_vm3, 1.0, %v3032_v32  ;;  %v331_v4 = vld [vmem:[%s3011_s0 + $0x78] sm:$0xff]  ;;  %v330_v6 = vld [vmem:[%s3011_s0 + $0x70] sm:$0xff]  ;;  %vm482_vm3 = vmand %vm427_vm6, %vm2239_vm5  ;;  %v399_v7 = vpop.permute.xlu1 %398  ;;  %vm430_vm0 = vcmp.eq.s32.totalorder %v390_v54, %v2421_v33 }
 0x126   :  { %3090 = vst [vmem:[#allocation13_spill] sm:$0xff] %v3089_v36  ;;  %v2509_v61 = vmul.f32 %v2347_v11, %v1831_v46  ;;  %v2524_v23 = vsel %vm480_vm10, 1.0, %v3032_v32  ;;  %v2532_v59 = vsel %vm482_vm3, 1.0, %v3032_v32  ;;  %vm481_vm1 = vmand %vm426_vm13, %vm2313_vm14  ;;  %vm428_vm10 = vcmp.eq.s32.totalorder %v2396_v28, %v2421_v33 }
 0x127   :  { %3091 = vst [vmem:[#allocation14_spill] sm:$0xff] %v2504_v35  ;;  %v2540_v45 = vsel %vm481_vm1, 1.0, %v3032_v32  ;;  %vm433_vm6 = vcmp.eq.s32.totalorder %v399_v7, %v2421_v33  ;;  %vm483_vm3 = vmand %vm428_vm10, %vm2301_vm12  ;;  %vm432_vm10 = vcmp.eq.s32.totalorder %v396_v29, %v2421_v33  ;;  %v627_v36 = vsub.f32 %v2285_v55, %v2343_v9 }
 0x128   :  { %3092 = vst [vmem:[#allocation15_spill] sm:$0xff] %v2509_v61  ;;  %v405_v13 = vpop.permute.xlu0 %404  ;;  %vm488_vm13 = vmand %vm433_vm6, %vm2252_vm7  ;;  %v648_v49 = vsel %vm2252_vm7, %v632_v47, -1e+30  ;;  %vm3110_vm7 = vnez %v3077_v30  ;;  %v579_v30 = vsub.f32 -1e+30, %v2343_v9 }
 0x129   :  { %1446 = vmax.xlane.f32.xlu1 %v2431_v44  ;;  %1436 = vmax.xlane.f32.xlu0 %v2429_v40  ;;  %v402_v28 = vpop.permute.xlu1 %401  ;;  %vm435_vm1 = vcmp.eq.s32.totalorder %v405_v13, %v2421_v33  ;;  %vm485_vm14 = vmand %vm430_vm0, %vm2469_vm9  ;;  %v643_v37 = vsel %vm2301_vm12, %v627_v36, -1e+30  ;;  %v672_v43 = vmul.f32 1.442695, %v648_v49  ;;  %v578_v36 = vsub.f32 -1e+30, %v2268_v50 }
 0x12a   :  { %v2558_v54 = vsel %vm485_vm14, 1.0, %v3032_v32  ;;  %vm490_vm6 = vmand %vm435_vm1, %vm2232_vm4  ;;  %vm3097_vm14 = vnez %v3072_v16  ;;  %v587_v31 = vsub.f32 -1e+30, %v2382_v24 }
 0x12b   :  { %3093 = vst [vmem:[#allocation16_spill] sm:$0xff] %v2558_v54  ;;  %vm487_vm0 = vmand %vm432_vm10, %vm2411_vm2  ;;  %v2575_v7 = vsel %vm490_vm6, 1.0, %v3032_v32  ;;  %vm3100_vm6 = vnez %v3068_v2  ;;  %v628_v2 = vsub.f32 %v2368_v18, %v2457_v1  ;;  %v629_v18 = vsub.f32 %v2384_v25, %v2496_v38 }
 0x12c   :  { %v2572_v29 = vsel %vm487_vm0, 1.0, %v3032_v32  ;;  %3096 = vst [vmem:[#allocation19_spill] sm:$0xff] %v2575_v7 }
 0x12d   :  { %1426 = vmax.xlane.f32.xlu1 %v2457_v1  ;;  %1432 = vmax.xlane.f32.xlu0 %v2459_v3  ;;  %3095 = vst [vmem:[#allocation18_spill] sm:$0xff] %v2572_v29 }
 0x131   :  { %1442 = vmax.xlane.f32.xlu1 %v2477_v15  ;;  %1448 = vmax.xlane.f32.xlu0 %v2479_v20 }
 0x135   :  { %1428 = vmax.xlane.f32.xlu0 %v2496_v38 }
 0x139   :  { %1444 = vmax.xlane.f32.xlu0 %v2504_v35 }
 0x142   :  { %419 = vperm.xlu1 %1925, %v331_v4   ;;  %v2548_v4 = vsel %vm483_vm3, 1.0, %v3032_v32  ;;  %vm434_vm3 = vcmp.eq.s32.totalorder %v402_v28, %v2421_v33 }
 0x14f   :  { %416 = vperm.xlu0 %1924, %v330_v6   ;;  %v2561_v6 = vsel %vm488_vm13, 1.0, %v3032_v32  ;;  %vm489_vm13 = vmand %vm434_vm3, %vm3097_vm14 }
 0x150   :  { %3094 = vst [vmem:[#allocation17_spill] sm:$0xff] %v2561_v6  ;;  %v2585_v28 = vsel %vm489_vm13, 1.0, %v3032_v32  ;;  %vm3114_vm13 = vnez %v3074_v26 }
 0x151   :  { %3098 = vst [vmem:[#allocation20_spill] sm:$0xff] %v2585_v28 }
 0x166   :  { %1674 = vadd.xlane.f32.xlu1 %v2524_v23 }
 0x16a   :  { %1678 = vadd.xlane.f32.xlu1 %v2532_v59 }
 0x16e   :  { %1676 = vadd.xlane.f32.xlu0 %v2540_v45  ;;  %1682 = vadd.xlane.f32.xlu1 %v1829_v14  ;;  %v411_v14 = vpop.permute.xlu0 %410 }
 0x16f   :  { %vm437_vm9 = vcmp.eq.s32.totalorder %v411_v14, %v2421_v33 }
 0x170   :  { %vm492_vm1 = vmand %vm437_vm9, %vm2441_vm15 }
 0x171   :  { %v2588_v14 = vsel %vm492_vm1, 1.0, %v3032_v32 }
 0x172   :  { %1680 = vadd.xlane.f32.xlu0 %v2548_v4  ;;  %1686 = vadd.xlane.f32.xlu1 %v1831_v46  ;;  %v408_v46 = vpop.permute.xlu1 %407  ;;  %3099 = vst [vmem:[#allocation21_spill] sm:$0xff] %v2588_v14 }
 0x173   :  { %vm436_vm10 = vcmp.eq.s32.totalorder %v408_v46, %v2421_v33 }
 0x174   :  { %vm491_vm3 = vmand %vm436_vm10, %vm3100_vm6 }
 0x176   :  { %1684 = vadd.xlane.f32.xlu0 %v2558_v54  ;;  %1690 = vadd.xlane.f32.xlu1 %v2561_v6  ;;  %v414_v13 = vpop.permute.xlu1 %413 }
 0x177   :  { %vm438_vm0 = vcmp.eq.s32.totalorder %v414_v13, %v2421_v33 }
 0x178   :  { %vm493_vm9 = vmand %vm438_vm0, %vm2490_vm11 }
 0x179   :  { %v2602_v46 = vsel %vm493_vm9, 1.0, %v3032_v32 }
 0x17a   :  { %1688 = vadd.xlane.f32.xlu0 %v2572_v29  ;;  %1694 = vadd.xlane.f32.xlu1 %v2575_v7  ;;  %v2596_v7 = vsel %vm491_vm3, 1.0, %v3032_v32  ;;  %3102 = vst [vmem:[#allocation23_spill] sm:$0xff] %v2602_v46  ;;  %v634_v32 = vsub.f32 %v2248_v42, %v2270_v51  ;;  %v635_v42 = vsub.f32 %v2287_v56, %v2382_v24 }
 0x17b   :  { %3101 = vst [vmem:[#allocation22_spill] sm:$0xff] %v2596_v7 }
 0x17c   :  { %v650_v27 = vsel %vm2232_vm4, %v634_v32, -1e+30  ;;  %vm3108_vm4 = vnez %v3066_v0 }
 0x17d   :  { %v676_v54 = vmul.f32 1.442695, %v650_v27  ;;  %v641_v47 = vsel %vm3108_vm4, %v625_v39, -1e+30  ;;  %v662_v27 = vmul.f32 1.442695, %v643_v37 }
 0x17e   :  { %1692 = vadd.xlane.f32.xlu0 %v2585_v28  ;;  %1698 = vadd.xlane.f32.xlu1 %v2588_v14  ;;  %v626_v28 = vsub.f32 %v2246_v41, %v2268_v50  ;;  %v658_v49 = vmul.f32 1.442695, %v641_v47 }
 0x180   :  { %v642_v34 = vsel %vm2239_vm5, %v626_v28, -1e+30  ;;  %vm3109_vm5 = vnez %v3070_v5 }
 0x181   :  { %v660_v28 = vmul.f32 1.442695, %v642_v34  ;;  %v630_v34 = vsub.f32 %v2347_v11, %v2366_v17  ;;  %v631_v11 = vsub.f32 %v2376_v21, %v2459_v3 }
 0x182   :  { %1696 = vadd.xlane.f32.xlu0 %v2596_v7 }
 0x183   :  { %1942 = vpow2.f32 %v660_v28  ;;  %v646_v0 = vsel %vm3109_vm5, %v630_v34, -1e+30  ;;  %v644_v28 = vsel %vm3110_vm7, %v628_v2, -1e+30 }
 0x184   :  { %1944 = vpow2.f32 %v676_v54  ;;  %v596_v54 = vmul.f32 1.442695, %v578_v36  ;;  %v668_v39 = vmul.f32 1.442695, %v646_v0 }
 0x186   :  { %1700 = vadd.xlane.f32.xlu0 %v2602_v46  ;;  %v624_v46 = vsub.f32 %v2264_v48, %v2307_v62 }
 0x188   :  { %v640_v35 = vsel %vm2274_vm8, %v624_v46, -1e+30  ;;  %v651_v46 = vsel %vm3100_vm6, %v635_v42, -1e+30  ;;  %vm3111_vm8 = vnez %v3086_v8 }
 0x189   :  { %v656_v52 = vmul.f32 1.442695, %v640_v35 }
 0x18b   :  { %1946 = vpow2.f32 %v656_v52  ;;  %v647_v52 = vsel %vm2411_vm2, %v631_v11, -1e+30  ;;  %vm3112_vm2 = vnez %v3084_v53  ;;  %v2732_v53 = vmul.f32 %v2524_v23, %v2264_v48 }
 0x18c   :  { %1948 = vpow2.f32 %v672_v43  ;;  %v664_v43 = vmul.f32 1.442695, %v644_v28  ;;  %v670_v47 = vmul.f32 1.442695, %v647_v52 }
 0x18d   :  { %1950 = vpow2.f32 %v662_v27  ;;  %v638_v27 = vsub.f32 %v2349_v12, %v2431_v44  ;;  %v2689_v36 = vpop.eup %1942 }
 0x18f   :  { %v654_v52 = vsel %vm3114_vm13, %v638_v27, -1e+30 }
 0x1a6   :  { %v2605_v6 = vpop.xlane.xlu1 %1438  ;;  %v2607_v14 = vpop.xlane.xlu0 %1422 }
 0x1a7   :  { %3103 = vst [vmem:[#allocation24_spill] sm:$0xff] %v2605_v6 }
 0x1aa   :  { %v2609_v61 = vpop.xlane.xlu1 %1434  ;;  %v2611_v13 = vpop.xlane.xlu0 %1418 }
 0x1ab   :  { %3104 = vst [vmem:[#allocation25_spill] sm:$0xff] %v2609_v61  ;;  %v1450_v8 = vsub.f32 %v2307_v62, %v2611_v13 }
 0x1ae   :  { %v2615_v7 = vpop.xlane.xlu1 %1420  ;;  %v2617_v29 = vpop.xlane.xlu0 %1424 }
 0x1af   :  { %3105 = vst [vmem:[#allocation26_spill] sm:$0xff] %v2615_v7 }
 0x1b2   :  { %v2629_v61 = vpop.xlane.xlu1 %1430  ;;  %v2631_v7 = vpop.xlane.xlu0 %1440 }
 0x1b3   :  { %3106 = vst [vmem:[#allocation27_spill] sm:$0xff] %v2629_v61  ;;  %3107 = vst [vmem:[#allocation28_spill] sm:$0xff] %v2631_v7  ;;  %v633_v61 = vsub.f32 %v2293_v58, %v2429_v40  ;;  %v678_v58 = vmul.f32 1.442695, %v651_v46  ;;  %v1452_v46 = vsub.f32 %v2268_v50, %v2607_v14  ;;  %v639_v50 = vsub.f32 %v2379_v22, %v2479_v20 }
 0x1b4   :  { %v1461_v23 = vsub.f32 %v2382_v24, %v2631_v7 }
 0x1b5   :  { %v649_v60 = vsel %vm3097_vm14, %v633_v61, -1e+30  ;;  %v576_v61 = vsub.f32 -1e+30, %v2307_v62  ;;  %1952 = vpow2.f32 %v678_v58  ;;  %v645_v58 = vsel %vm3111_vm8, %v629_v18, -1e+30 }
 0x1b6   :  { %v2647_v32 = vpop.xlane.xlu1 %1446  ;;  %v2649_v56 = vpop.xlane.xlu0 %1436  ;;  %v674_v16 = vmul.f32 1.442695, %v649_v60  ;;  %1954 = vpow2.f32 %v658_v49  ;;  %v1470_v2 = vmul.f32 1.442695, %v1452_v46  ;;  %v666_v0 = vmul.f32 1.442695, %v645_v58 }
 0x1b7   :  { %v592_v34 = vmul.f32 1.442695, %v576_v61  ;;  %v2696_v49 = vpop.eup %1944  ;;  %v3113_v18 = vmov 0.0   ;;  %v2708_v62 = vmul.f32 %v2246_v41, %v2532_v59  ;;  %v614_v46 = vmul.f32 1.442695, %v587_v31 }
 0x1b8   :  { %1956 = vpow2.f32 %v674_v16  ;;  %v586_v16 = vsub.f32 -1e+30, %v2270_v51  ;;  %v2703_v61 = vpop.eup %1946  ;;  %v1466_v41 = vmul.f32 1.442695, %v1450_v8  ;;  %v1453_v59 = vsub.f32 %v2343_v9, %v2617_v29 }
 0x1b9   :  { %1958 = vpow2.f32 %v596_v54  ;;  %v2710_v28 = vpop.eup %1948  ;;  %v684_v31 = vmul.f32 1.442695, %v654_v52 }
 0x1ba   :  { %v2662_v42 = vpop.xlane.xlu1 %1426  ;;  %v2664_v35 = vpop.xlane.xlu0 %1432  ;;  %1960 = vpow2.f32 %v668_v39  ;;  %v598_v39 = vmul.f32 1.442695, %v579_v30  ;;  %v612_v27 = vmul.f32 1.442695, %v586_v16  ;;  %v1472_v48 = vmul.f32 1.442695, %v1453_v59 }
 0x1bb   :  { %1962 = vpow2.f32 %v592_v34  ;;  %v2717_v58 = vpop.eup %1950  ;;  %v707_v16 = vmul.f32 %v2285_v55, %v2548_v4  ;;  %v3118_v55 = vld [vmem:[#allocation25_spill] sm:$0xff] }
 0x1bc   :  { %1964 = vpow2.f32 %v664_v43  ;;  %v655_v43 = vsel %vm3112_vm2, %v639_v50, -1e+30  ;;  %v584_v50 = vsub.f32 -1e+30, %v2309_v63  ;;  %v1458_v4 = vsub.f32 %v2309_v63, %v3118_v55 }
 0x1bd   :  { %1966 = vpow2.f32 %v670_v47  ;;  %v705_v47 = vmul.f32 %v2540_v45, %v2291_v57  ;;  %v686_v8 = vmul.f32 1.442695, %v655_v43  ;;  %v1460_v57 = vsub.f32 %v2270_v51, %v2605_v6 }
 0x1be   :  { %v2675_v37 = vpop.xlane.xlu1 %1442  ;;  %v2677_v5 = vpop.xlane.xlu0 %1448  ;;  %1968 = vpow2.f32 %v1470_v2  ;;  %v583_v43 = vsub.f32 -1e+30, %v2459_v3  ;;  %v608_v59 = vmul.f32 1.442695, %v584_v50  ;;  %v577_v2 = vsub.f32 -1e+30, %v2345_v10 }
 0x1bf   :  { %v2723_v30 = vpop.eup %1952  ;;  %1970 = vpow2.f32 %v666_v0  ;;  %v1486_v6 = vmul.f32 1.442695, %v1460_v57  ;;  %v591_v63 = vsub.f32 -1e+30, %v2479_v20  ;;  %v582_v57 = vsub.f32 -1e+30, %v2366_v17 }
 0x1c0   :  { %1972 = vpow2.f32 %v598_v39  ;;  %v3115_v39 = vld [vmem:[#allocation16_spill] sm:$0xff] }
 0x1c1   :  { %1974 = vpow2.f32 %v614_v46  ;;  %v709_v52 = vmul.f32 %v3115_v39, %v2384_v25  ;;  %v3116_v46 = vld [vmem:[#allocation14_spill] sm:$0xff] }
 0x1c2   :  { %v420_v60 = vpop.permute.xlu1 %419  ;;  %v2698_v11 = vpop.xlane.xlu0 %1428  ;;  %1976 = vpow2.f32 %v1466_v41 }
 0x1c3   :  { %vm440_vm12 = vcmp.eq.s32.totalorder %v420_v60, %v2421_v33  ;;  %v2728_v60 = vpop.eup %1954  ;;  %1978 = vpow2.f32 %v612_v27 }
 0x1c4   :  { %vm495_vm14 = vmand %vm440_vm12, %vm3112_vm2  ;;  %v2735_v9 = vpop.eup %1956  ;;  %1980 = vpow2.f32 %v684_v31  ;;  %v1459_v31 = vsub.f32 %v2429_v40, %v2649_v56 }
 0x1c5   :  { %v1840_v54 = vsel %vm495_vm14, 1.0, %v3113_v18  ;;  %v1959_v0 = vpop.eup %1958  ;;  %1982 = vpow2.f32 %v686_v8  ;;  %v606_v8 = vmul.f32 1.442695, %v583_v43 }
 0x1c6   :  { %1704 = vadd.xlane.f32.xlu0 %v1840_v54  ;;  %v2715_v34 = vmul.f32 %v2379_v22, %v1840_v54  ;;  %v585_v22 = vsub.f32 -1e+30, %v2429_v40  ;;  %v2741_v45 = vpop.xlane.xlu0 %1444  ;;  %v2747_v54 = vpop.eup %1960  ;;  %v786_v25 = vmul.f32 0.0, %v1959_v0  ;;  %1984 = vpow2.f32 %v1472_v48 }
 0x1c7   :  { %v1963_v24 = vpop.eup %1962  ;;  %v594_v40 = vmul.f32 1.442695, %v577_v2  ;;  %v1457_v2 = vsub.f32 %v2459_v3, %v2664_v35 }
 0x1c8   :  { %v610_v51 = vmul.f32 1.442695, %v585_v22  ;;  %v2757_v27 = vpop.eup %1964  ;;  %v1488_v22 = vmul.f32 1.442695, %v1461_v23  ;;  %v784_v23 = vmul.f32 0.0, %v1963_v24  ;;  %v802_v39 = vadd.f32 %v2689_v36, %v786_v25 }
 0x1c9   :  { %v2762_v50 = vpop.eup %1966  ;;  %v604_v36 = vmul.f32 1.442695, %v582_v57  ;;  %v590_v25 = vsub.f32 -1e+30, %v2431_v44  ;;  %v589_v57 = vsub.f32 -1e+30, %v3116_v46 }
 0x1ca   :  { %1628 = vadd.xlane.f32.xlu0 %v705_v47  ;;  %v3117_v47 = vld [vmem:[#allocation10_spill] sm:$0xff]  ;;  %1986 = vpow2.f32 %v610_v51  ;;  %v1969_v0 = vpop.eup %1968  ;;  %v800_v55 = vadd.f32 %v2703_v61, %v784_v23  ;;  %v1465_v61 = vsub.f32 %v2479_v20, %v2677_v5  ;;  %v1464_v20 = vsub.f32 %v2431_v44, %v2647_v32 }
 0x1cb   :  { %v637_v41 = vsub.f32 %v3117_v47, %v3116_v46  ;;  %1988 = vpow2.f32 %v608_v59  ;;  %v1484_v59 = vmul.f32 1.442695, %v1459_v31  ;;  %v1516_v24 = vmul.f32 %v1969_v0, %v802_v39  ;;  %v3121_v31 = vld [vmem:[#allocation27_spill] sm:$0xff] }
 0x1cc   :  { %1990 = vpow2.f32 %v1486_v6  ;;  %v1456_v43 = vsub.f32 %v2366_v17, %v3121_v31  ;;  %v580_v17 = vsub.f32 -1e+30, %v2457_v1  ;;  %v620_v39 = vmul.f32 1.442695, %v590_v25 }
 0x1cd   :  { %1992 = vpow2.f32 %v1488_v22  ;;  %v588_v25 = vsub.f32 -1e+30, %v2477_v15 }
 0x1ce   :  { %1632 = vadd.xlane.f32.xlu0 %v707_v16  ;;  %v417_v7 = vpop.permute.xlu0 %416  ;;  %v2771_v16 = vpop.eup %1970  ;;  %1994 = vpow2.f32 %v606_v8 }
 0x1cf   :  { %vm439_vm1 = vcmp.eq.s32.totalorder %v417_v7, %v2421_v33  ;;  %v1482_v33 = vmul.f32 1.442695, %v1458_v4  ;;  %v3119_v7 = vld [vmem:[#allocation26_spill] sm:$0xff]  ;;  %v1973_v51 = vpop.eup %1972  ;;  %v622_v4 = vmul.f32 1.442695, %v591_v63  ;;  %1996 = vpow2.f32 %v594_v40 }
 0x1d0   :  { %vm494_vm10 = vmand %vm439_vm1, %vm3114_vm13  ;;  %v1451_v26 = vsub.f32 %v2345_v10, %v3119_v7  ;;  %v1975_v6 = vpop.eup %1974  ;;  %v581_v10 = vsub.f32 -1e+30, %v2496_v38  ;;  %v787_v3 = vmul.f32 0.0, %v1973_v51  ;;  %v1480_v63 = vmul.f32 1.442695, %v1457_v2 }
 0x1d1   :  { %v2769_v48 = vsel %vm494_vm10, 1.0, %v3113_v18  ;;  %v2779_v18 = vsel %vm2490_vm11, %v637_v41, -1e+30  ;;  %1998 = vpow2.f32 %v1482_v33 }
 0x1d2   :  { %1636 = vadd.xlane.f32.xlu0 %v709_v52  ;;  %1702 = vadd.xlane.f32.xlu1 %v2769_v48  ;;  %v1977_v52 = vpop.eup %1976  ;;  %v1468_v22 = vmul.f32 1.442695, %v1451_v26  ;;  %2000 = vpow2.f32 %v1484_v59  ;;  %v602_v40 = vmul.f32 1.442695, %v581_v10  ;;  %v795_v26 = vmul.f32 0.0, %v1975_v6 }
 0x1d3   :  { %v1979_v41 = vpop.eup %1978  ;;  %v1514_v23 = vmul.f32 %v1977_v52, %v800_v55  ;;  %2002 = vpow2.f32 %v622_v4  ;;  %v1478_v59 = vmul.f32 1.442695, %v1456_v43  ;;  %v803_v55 = vadd.f32 %v2717_v58, %v787_v3  ;;  %v3122_v3 = vld [vmem:[#allocation12_spill] sm:$0xff] }
 0x1d4   :  { %v2789_v8 = vpop.eup %1980  ;;  %2004 = vpow2.f32 %v604_v36  ;;  %v1455_v6 = vsub.f32 %v2496_v38, %v2698_v11  ;;  %v618_v4 = vmul.f32 1.442695, %v589_v57  ;;  %v600_v36 = vmul.f32 1.442695, %v580_v17 }
 0x1d5   :  { %v2794_v0 = vpop.eup %1982  ;;  %2006 = vpow2.f32 %v1468_v22  ;;  %v811_v44 = vadd.f32 %v2723_v30, %v795_v26  ;;  %v1494_v43 = vmul.f32 1.442695, %v1464_v20  ;;  %v1454_v38 = vsub.f32 %v2457_v1, %v2662_v42 }
 0x1d6   :  { %1534 = vadd.xlane.f32.xlu0 %v1516_v24  ;;  %1626 = vadd.xlane.f32.xlu1 %v2732_v53  ;;  %v1985_v33 = vpop.eup %1984  ;;  %v794_v53 = vmul.f32 0.0, %v1979_v41  ;;  %2008 = vpow2.f32 %v1480_v63  ;;  %v1496_v24 = vmul.f32 1.442695, %v1465_v61  ;;  %v3123_v57 = vsub.f32 %v2373_v19, %v2477_v15 }
 0x1d7   :  { %v1987_v51 = vpop.eup %1986  ;;  %v1517_v52 = vmul.f32 %v1985_v33, %v803_v55  ;;  %2010 = vpow2.f32 %v602_v40  ;;  %v1463_v40 = vsub.f32 %v3116_v46, %v2741_v45  ;;  %v682_v33 = vmul.f32 1.442695, %v2779_v18 }
 0x1d8   :  { %v1989_v2 = vpop.eup %1988  ;;  %v793_v22 = vmul.f32 0.0, %v1987_v51  ;;  %2012 = vpow2.f32 %v620_v39  ;;  %v652_v30 = vsel %vm2441_vm15, %v3123_v57, -1e+30  ;;  %v1474_v55 = vmul.f32 1.442695, %v1454_v38 }
 0x1d9   :  { %v1991_v10 = vpop.eup %1990  ;;  %2014 = vpow2.f32 %v1478_v59  ;;  %v792_v63 = vmul.f32 0.0, %v1989_v2  ;;  %v616_v59 = vmul.f32 1.442695, %v588_v25  ;;  %v1462_v18 = vsub.f32 %v2477_v15, %v2675_v37 }
 0x1da   :  { %1530 = vadd.xlane.f32.xlu0 %v1514_v23  ;;  %1630 = vadd.xlane.f32.xlu1 %v2708_v62  ;;  %v1993_v41 = vpop.eup %1992  ;;  %v810_v62 = vadd.f32 %v2696_v49, %v794_v53  ;;  %2016 = vpow2.f32 %v1496_v24  ;;  %v1476_v49 = vmul.f32 1.442695, %v1455_v6  ;;  %v809_v39 = vadd.f32 %v2735_v9, %v793_v22 }
 0x1db   :  { %v1995_v58 = vpop.eup %1994  ;;  %v1525_v1 = vmul.f32 %v1993_v41, %v811_v44  ;;  %2018 = vpow2.f32 %v618_v4  ;;  %v808_v2 = vadd.f32 %v2710_v28, %v792_v63  ;;  %v1492_v6 = vmul.f32 1.442695, %v1463_v40 }
 0x1dc   :  { %v1997_v61 = vpop.eup %1996  ;;  %v1524_v26 = vmul.f32 %v1991_v10, %v810_v62  ;;  %v791_v51 = vmul.f32 0.0, %v1995_v58  ;;  %2020 = vpow2.f32 %v600_v36  ;;  %v680_v36 = vmul.f32 1.442695, %v652_v30 }
 0x1dd   :  { %v1999_v17 = vpop.eup %1998  ;;  %2022 = vpow2.f32 %v1494_v43  ;;  %v785_v46 = vmul.f32 0.0, %v1997_v61  ;;  %v1490_v22 = vmul.f32 1.442695, %v1462_v18  ;;  %vm1786_vm15 = vcmask 7168  }
 0x1de   :  { %1536 = vadd.xlane.f32.xlu0 %v1517_v52  ;;  %1634 = vadd.xlane.f32.xlu1 %v3122_v3  ;;  %v2001_v53 = vpop.eup %2000  ;;  %2024 = vpow2.f32 %v1476_v49  ;;  %v1522_v10 = vmul.f32 %v1999_v17, %v808_v2  ;;  %v807_v25 = vadd.f32 %v2762_v50, %v791_v51 }
 0x1df   :  { %v2003_v20 = vpop.eup %2002  ;;  %2026 = vpow2.f32 %v682_v33  ;;  %v1523_v9 = vmul.f32 %v2001_v53, %v809_v39  ;;  %v801_v28 = vadd.f32 %v2728_v60, %v785_v46 }
 0x1e0   :  { %v2005_v24 = vpop.eup %2004  ;;  %2028 = vpow2.f32 %v616_v59  ;;  %v799_v44 = vmul.f32 0.0, %v2003_v20 }
 0x1e1   :  { %v2007_v4 = vpop.eup %2006  ;;  %2030 = vpow2.f32 %v1474_v55  ;;  %v790_v62 = vmul.f32 0.0, %v2005_v24 }
 0x1e2   :  { %1552 = vadd.xlane.f32.xlu0 %v1525_v1  ;;  %1550 = vadd.xlane.f32.xlu1 %v1524_v26  ;;  %v2009_v52 = vpop.eup %2008  ;;  %2032 = vpow2.f32 %v1492_v6  ;;  %v1515_v38 = vmul.f32 %v2007_v4, %v801_v28  ;;  %v815_v50 = vadd.f32 %v2794_v0, %v799_v44  ;;  %v3130_v28 = vld [vmem:[#allocation8_spill] sm:$0xff] }
 0x1e3   :  { %v2011_v41 = vpop.eup %2010  ;;  %v1521_v43 = vmul.f32 %v2009_v52, %v807_v25  ;;  %2034 = vpow2.f32 %v680_v36  ;;  %v806_v61 = vadd.f32 %v2747_v54, %v790_v62  ;;  %v3126_v52 = vld [vmem:[#allocation9_spill] sm:$0xff]  ;;  %v3127_v36 = vld [vmem:[#allocation20_spill] sm:$0xff]  ;;  %v3131_v62 = vld [vmem:[#allocation7_spill] sm:$0xff] }
 0x1e4   :  { %v2013_v15 = vpop.eup %2012  ;;  %v789_v57 = vmul.f32 0.0, %v2011_v41  ;;  %2036 = vpow2.f32 %v1490_v22  ;;  %v713_v25 = vmul.f32 %v3127_v36, %v3126_v52  ;;  %v3128_v41 = vld [vmem:[#allocation15_spill] sm:$0xff] }
 0x1e5   :  { %v2015_v58 = vpop.eup %2014  ;;  %v798_v23 = vmul.f32 0.0, %v2013_v15  ;;  %v3132_v15 = vld [vmem:[#allocation17_spill] sm:$0xff] }
 0x1e6   :  { %1548 = vadd.xlane.f32.xlu0 %v1523_v9  ;;  %1546 = vadd.xlane.f32.xlu1 %v1522_v10  ;;  %v2017_v3 = vpop.eup %2016  ;;  %v1520_v40 = vmul.f32 %v2015_v58, %v806_v61  ;;  %v805_v1 = vadd.f32 %v2771_v16, %v789_v57  ;;  %v712_v22 = vmul.f32 %v3132_v15, %v3131_v62  ;;  %v3133_v58 = vld [vmem:[#allocation23_spill] sm:$0xff] }
 0x1e7   :  { %v2019_v63 = vpop.eup %2018  ;;  %v1529_v49 = vmul.f32 %v2017_v3, %v815_v50  ;;  %v814_v26 = vadd.f32 %v2789_v8, %v798_v23  ;;  %v3125_v8 = vld [vmem:[#allocation18_spill] sm:$0xff]  ;;  %v718_v61 = vmul.f32 %v2349_v12, %v2769_v48 }
 0x1e8   :  { %v2021_v60 = vpop.eup %2020  ;;  %v797_v53 = vmul.f32 0.0, %v2019_v63  ;;  %v711_v9 = vmul.f32 %v2376_v21, %v3125_v8  ;;  %v717_v21 = vmul.f32 %v3133_v58, %v3117_v47  ;;  %v3136_v63 = vld [vmem:[#allocation21_spill] sm:$0xff] }
 0x1e9   :  { %v2023_v30 = vpop.eup %2022  ;;  %v788_v39 = vmul.f32 0.0, %v2021_v60  ;;  %v716_v50 = vmul.f32 %v3136_v63, %v2373_v19 }
 0x1ea   :  { %1544 = vadd.xlane.f32.xlu0 %v1521_v43  ;;  %1532 = vadd.xlane.f32.xlu1 %v1515_v38  ;;  %v2025_v17 = vpop.eup %2024  ;;  %v1528_v59 = vmul.f32 %v2023_v30, %v814_v26  ;;  %v3134_v43 = vld [vmem:[#allocation19_spill] sm:$0xff]  ;;  %v3135_v38 = vld [vmem:[#allocation6_spill] sm:$0xff] }
 0x1eb   :  { %v2027_v33 = vpop.eup %2026  ;;  %v1519_v54 = vmul.f32 %v2025_v17, %v805_v1  ;;  %v804_v2 = vadd.f32 %v2757_v27, %v788_v39  ;;  %v3129_v27 = vld [vmem:[#allocation22_spill] sm:$0xff]  ;;  %v714_v3 = vmul.f32 %v3135_v38, %v3134_v43 }
 0x1ec   :  { %v2029_v0 = vpop.eup %2028  ;;  %v813_v55 = vadd.f32 %v2027_v33, %v797_v53  ;;  %v715_v44 = vmul.f32 %v3130_v28, %v3129_v27 }
 0x1ed   :  { %v2031_v51 = vpop.eup %2030  ;;  %v796_v46 = vmul.f32 0.0, %v2029_v0 }
 0x1ee   :  { %1560 = vadd.xlane.f32.xlu0 %v1529_v49  ;;  %1542 = vadd.xlane.f32.xlu1 %v1520_v40  ;;  %v2033_v20 = vpop.eup %2032  ;;  %v1518_v6 = vmul.f32 %v2031_v51, %v804_v2 }
 0x1ef   :  { %v2035_v24 = vpop.eup %2034  ;;  %v1527_v18 = vmul.f32 %v2033_v20, %v813_v55 }
 0x1f0   :  { %v2037_v4 = vpop.eup %2036  ;;  %v812_v16 = vadd.f32 %v2035_v24, %v796_v46 }
 0x1f2   :  { %1540 = vadd.xlane.f32.xlu0 %v1519_v54  ;;  %1558 = vadd.xlane.f32.xlu1 %v1528_v59  ;;  %v1526_v10 = vmul.f32 %v2037_v4, %v812_v16 }
 0x1f3   :  { %v1675_v47 = vpop.xlane.xlu1 %1674 }
 0x1f6   :  { %1556 = vadd.xlane.f32.xlu0 %v1527_v18  ;;  %1538 = vadd.xlane.f32.xlu1 %v1518_v6 }
 0x1f7   :  { %v1679_v30 = vpop.xlane.xlu1 %1678 }
 0x1fa   :  { %1640 = vadd.xlane.f32.xlu0 %v711_v9  ;;  %1554 = vadd.xlane.f32.xlu1 %v1526_v10 }
 0x1fb   :  { %v2846_v57 = vpop.xlane.xlu0 %1676  ;;  %v2854_v40 = vpop.xlane.xlu1 %1682 }
 0x1fe   :  { %1644 = vadd.xlane.f32.xlu0 %v713_v25  ;;  %1638 = vadd.xlane.f32.xlu1 %v3128_v41 }
 0x1ff   :  { %v2848_v23 = vpop.xlane.xlu0 %1680 }
 0x202   :  { %1648 = vadd.xlane.f32.xlu0 %v715_v44  ;;  %1642 = vadd.xlane.f32.xlu1 %v712_v22 }
 0x203   :  { %v2850_v60 = vpop.xlane.xlu0 %1684 }
 0x206   :  { %1652 = vadd.xlane.f32.xlu0 %v717_v21  ;;  %1646 = vadd.xlane.f32.xlu1 %v714_v3 }
 0x207   :  { %v2852_v49 = vpop.xlane.xlu0 %1688 }
 0x20a   :  { %1656 = vadd.xlane.f32.xlu0 %v2715_v34  ;;  %1650 = vadd.xlane.f32.xlu1 %v716_v50  ;;  %v2858_v34 = vpop.xlane.xlu1 %1686 }
 0x20b   :  { %v2856_v19 = vpop.xlane.xlu0 %1692 }
 0x20e   :  { %1654 = vadd.xlane.f32.xlu1 %v718_v61  ;;  %v2862_v12 = vpop.xlane.xlu1 %1690 }
 0x20f   :  { %v2860_v17 = vpop.xlane.xlu0 %1696 }
 0x212   :  { %v2868_v1 = vpop.xlane.xlu1 %1694 }
 0x213   :  { %v2864_v48 = vpop.xlane.xlu0 %1700 }
 0x216   :  { %v2872_v53 = vpop.xlane.xlu1 %1698 }
 0x253   :  { %v2866_v33 = vpop.xlane.xlu0 %1704 }
 0x257   :  { %v2870_v26 = vpop.xlane.xlu0 %1628 }
 0x25b   :  { %v2874_v39 = vpop.xlane.xlu0 %1632 }
 0x25f   :  { %v2876_v0 = vpop.xlane.xlu1 %1702  ;;  %v2878_v51 = vpop.xlane.xlu0 %1636 }
 0x263   :  { %v1627_v54 = vpop.xlane.xlu1 %1626  ;;  %v1535_v59 = vpop.xlane.xlu0 %1534 }
 0x264   :  { %2038 = vlog2.f32 %v1535_v59 }
 0x267   :  { %v1631_v20 = vpop.xlane.xlu1 %1630  ;;  %v1531_v55 = vpop.xlane.xlu0 %1530 }
 0x268   :  { %2040 = vlog2.f32 %v1531_v55 }
 0x26b   :  { %v2880_v2 = vpop.xlane.xlu1 %1634  ;;  %v1537_v46 = vpop.xlane.xlu0 %1536 }
 0x26c   :  { %2042 = vlog2.f32 %v1537_v46 }
 0x26d   :  { %2044 = vrcp.f32 %v1679_v30 }
 0x26e   :  { %v2039_v24 = vpop.eup %2038  ;;  %2046 = vrcp.f32 %v1675_v47 }
 0x26f   :  { %v1567_v18 = vmul.f32 0.6931472, %v2039_v24  ;;  %v1551_v6 = vpop.xlane.xlu1 %1550  ;;  %v1553_v4 = vpop.xlane.xlu0 %1552  ;;  %2048 = vrcp.f32 %v2854_v40 }
 0x270   :  { %2050 = vrcp.f32 %v2846_v57 }
 0x271   :  { %v1596_v16 = vadd.f32 %v1567_v18, %v2607_v14  ;;  %2052 = vrcp.f32 %v2848_v23 }
 0x272   :  { %v2041_v8 = vpop.eup %2040 }
 0x273   :  { %v1708_v9 = vmul.f32 %v1679_v30, %v1596_v16  ;;  %v1563_v10 = vmul.f32 0.6931472, %v2041_v8  ;;  %v1547_v52 = vpop.xlane.xlu1 %1546  ;;  %v1549_v36 = vpop.xlane.xlu0 %1548 }
 0x274   :  { %2054 = vlog2.f32 %v1549_v36 }
 0x275   :  { %v1724_v25 = vsub.f32 %v1631_v20, %v1708_v9  ;;  %v1594_v41 = vadd.f32 %v1563_v10, %v2611_v13  ;;  %2056 = vlog2.f32 %v1551_v6 }
 0x276   :  { %v2043_v27 = vpop.eup %2042  ;;  %2058 = vlog2.f32 %v1547_v52 }
 0x277   :  { %v1740_v28 = vmul.f32 -1.4285715, %v1724_v25  ;;  %v1706_v44 = vmul.f32 %v1675_v47, %v1594_v41  ;;  %v1569_v14 = vmul.f32 0.6931472, %v2043_v27  ;;  %v1533_v62 = vpop.xlane.xlu1 %1532  ;;  %v1545_v15 = vpop.xlane.xlu0 %1544 }
 0x278   :  { %v2045_v22 = vpop.eup %2044  ;;  %2060 = vlog2.f32 %v1533_v62 }
 0x279   :  { %v1759_v58 = vmul.f32 %v2045_v22, %v1740_v28  ;;  %v1722_v21 = vsub.f32 %v1627_v54, %v1706_v44  ;;  %v1597_v43 = vadd.f32 %v1569_v14, %v2617_v29  ;;  %2062 = vlog2.f32 %v1545_v15  ;;  %v2047_v38 = vpop.eup %2046 }
 0x27a   :  { %2064 = vlog2.f32 %v1553_v4  ;;  %v2894_v61 = vpop.eup %2048 }
 0x27b   :  { %2066 = vrcp.f32 %v2858_v34  ;;  %1789 = vst.msk [vmem:[%s3013_s4 + $0x10] sm:$0xff] %vm1786_vm15, %v1759_v58  ;;  %v1738_v13 = vmul.f32 -1.4285715, %v1722_v21  ;;  %v1709_v3 = vmul.f32 %v2848_v23, %v1597_v43  ;;  %v1543_v63 = vpop.xlane.xlu1 %1542  ;;  %v1561_v50 = vpop.xlane.xlu0 %1560 }
 0x27c   :  { %2068 = vlog2.f32 %v1543_v63  ;;  %v2896_v47 = vpop.eup %2050 }
 0x27d   :  { %2070 = vrcp.f32 %v2862_v12  ;;  %v1755_v29 = vmul.f32 %v2047_v38, %v1738_v13  ;;  %v1725_v30 = vsub.f32 %v2874_v39, %v1709_v3  ;;  %v2053_v54 = vpop.eup %2052 }
 0x27e   :  { %2072 = vrcp.f32 %v2850_v60  ;;  %v2055_v59 = vpop.eup %2054 }
 0x27f   :  { %2074 = vrcp.f32 %v2852_v49  ;;  %1787 = vst.msk [vmem:[%s3013_s4] sm:$0xff] %vm1786_vm15, %v1755_v29  ;;  %v1741_v23 = vmul.f32 -1.4285715, %v1725_v30  ;;  %v1559_v20 = vpop.xlane.xlu1 %1558  ;;  %v1541_v55 = vpop.xlane.xlu0 %1540  ;;  %v1581_v6 = vmul.f32 0.6931472, %v2055_v59 }
 0x280   :  { %v2057_v46 = vpop.eup %2056  ;;  %2076 = vlog2.f32 %v1561_v50  ;;  %v3137_v50 = vld [vmem:[#allocation25_spill] sm:$0xff] }
 0x281   :  { %v2059_v24 = vpop.eup %2058  ;;  %v1761_v18 = vmul.f32 %v2053_v54, %v1741_v23  ;;  %2078 = vlog2.f32 %v1541_v55  ;;  %v1603_v44 = vadd.f32 %v1581_v6, %v2649_v56  ;;  %v1583_v62 = vmul.f32 0.6931472, %v2057_v46  ;;  %v3139_v46 = vld [vmem:[#allocation24_spill] sm:$0xff] }
 0x282   :  { %v2061_v39 = vpop.eup %2060  ;;  %2080 = vrcp.f32 %v2856_v19  ;;  %v1579_v27 = vmul.f32 0.6931472, %v2059_v24 }
 0x283   :  { %v2063_v4 = vpop.eup %2062  ;;  %1790 = vst.msk [vmem:[%s3013_s4 + $0x18] sm:$0xff] %vm1786_vm15, %v1761_v18  ;;  %v1565_v16 = vmul.f32 0.6931472, %v2061_v39  ;;  %2082 = vlog2.f32 %v1559_v20  ;;  %v1539_v8 = vpop.xlane.xlu1 %1538  ;;  %v3138_v20 = vld [vmem:[#allocation28_spill] sm:$0xff] }
 0x284   :  { %v1557_v9 = vpop.xlane.xlu0 %1556  ;;  %v2065_v10 = vpop.eup %2064  ;;  %v1577_v52 = vmul.f32 0.6931472, %v2063_v4  ;;  %2084 = vlog2.f32 %v1539_v8  ;;  %v1602_v29 = vadd.f32 %v1579_v27, %v3137_v50 }
 0x285   :  { %v2911_v36 = vpop.eup %2066  ;;  %v1595_v25 = vadd.f32 %v1565_v16, %v3119_v7  ;;  %2086 = vlog2.f32 %v1557_v9  ;;  %v1585_v15 = vmul.f32 0.6931472, %v2065_v10 }
 0x286   :  { %v2069_v41 = vpop.eup %2068  ;;  %2088 = vrcp.f32 %v2868_v1  ;;  %v1601_v28 = vadd.f32 %v1577_v52, %v2664_v35  ;;  %v1714_v52 = vmul.f32 %v2862_v12, %v1602_v29 }
 0x287   :  { %v2917_v14 = vpop.eup %2070  ;;  %v1707_v22 = vmul.f32 %v2846_v57, %v1595_v25  ;;  %v1575_v58 = vmul.f32 0.6931472, %v2069_v41  ;;  %v1555_v21 = vpop.xlane.xlu1 %1554  ;;  %v1715_v57 = vmul.f32 %v2856_v19, %v1603_v44  ;;  %v1605_v55 = vadd.f32 %v1585_v15, %v3138_v20 }
 0x288   :  { %v1641_v43 = vpop.xlane.xlu0 %1640  ;;  %v2920_v38 = vpop.eup %2072  ;;  %2090 = vlog2.f32 %v1555_v21  ;;  %v1713_v7 = vmul.f32 %v2852_v49, %v1601_v28 }
 0x289   :  { %v2075_v13 = vpop.eup %2074  ;;  %2092 = vrcp.f32 %v2872_v53  ;;  %v1723_v35 = vsub.f32 %v2870_v26, %v1707_v22  ;;  %v1600_v56 = vadd.f32 %v1575_v58, %v3121_v31  ;;  %v1604_v26 = vadd.f32 %v1583_v62, %v3139_v46 }
 0x28a   :  { %v2077_v3 = vpop.eup %2076  ;;  %2094 = vrcp.f32 %v2860_v17  ;;  %v1729_v63 = vsub.f32 %v1641_v43, %v1713_v7 }
 0x28b   :  { %v2079_v30 = vpop.eup %2078  ;;  %v1739_v54 = vmul.f32 -1.4285715, %v1723_v35  ;;  %v1712_v59 = vmul.f32 %v2858_v34, %v1600_v56  ;;  %v1639_v49 = vpop.xlane.xlu1 %1638  ;;  %2096 = vrcp.f32 %v2864_v48  ;;  %v1593_v4 = vmul.f32 0.6931472, %v2077_v3 }
 0x28c   :  { %v1645_v23 = vpop.xlane.xlu0 %1644  ;;  %v2081_v24 = vpop.eup %2080  ;;  %v1573_v31 = vmul.f32 0.6931472, %v2079_v30  ;;  %v1745_v18 = vmul.f32 -1.4285715, %v1729_v63  ;;  %2098 = vrcp.f32 %v2866_v33  ;;  %v1716_v62 = vmul.f32 %v2868_v1, %v1604_v26 }
 0x28d   :  { %v1731_v39 = vsub.f32 %v1645_v23, %v1715_v57  ;;  %v2083_v6 = vpop.eup %2082  ;;  %v1757_v19 = vmul.f32 %v2896_v47, %v1739_v54  ;;  %v1728_v16 = vsub.f32 %v1639_v49, %v1712_v59  ;;  %v1717_v47 = vmul.f32 %v2860_v17, %v1605_v55 }
 0x28e   :  { %v2085_v34 = vpop.eup %2084  ;;  %v1599_v8 = vadd.f32 %v1573_v31, %v2698_v11  ;;  %v1769_v9 = vmul.f32 %v2075_v13, %v1745_v18  ;;  %v1609_v17 = vadd.f32 %v1593_v4, %v2677_v5  ;;  %v1591_v1 = vmul.f32 0.6931472, %v2083_v6 }
 0x28f   :  { %v1747_v10 = vmul.f32 -1.4285715, %v1731_v39  ;;  %v2087_v25 = vpop.eup %2086  ;;  %1788 = vst.msk [vmem:[%s3013_s4 + $0x8] sm:$0xff] %vm1786_vm15, %v1757_v19  ;;  %v1571_v41 = vmul.f32 0.6931472, %v2085_v34  ;;  %v1643_v28 = vpop.xlane.xlu1 %1642  ;;  %2100 = vrcp.f32 %v2876_v0 }
 0x290   :  { %v1744_v27 = vmul.f32 -1.4285715, %v1728_v16  ;;  %v1649_v44 = vpop.xlane.xlu0 %1648  ;;  %v2089_v15 = vpop.eup %2088  ;;  %v1711_v11 = vmul.f32 %v2850_v60, %v1599_v8  ;;  %v1589_v22 = vmul.f32 0.6931472, %v2087_v25  ;;  %1794 = vst.msk [vmem:[%s3013_s4 + $0x38] sm:$0xff] %vm1786_vm15, %v1769_v9  ;;  %v1730_v58 = vsub.f32 %v1643_v28, %v1714_v52 }
 0x291   :  { %v1773_v12 = vmul.f32 %v2081_v24, %v1747_v10  ;;  %v1598_v21 = vadd.f32 %v1571_v41, %v2662_v42  ;;  %v1733_v7 = vsub.f32 %v1649_v44, %v1717_v47  ;;  %v1721_v49 = vmul.f32 %v2866_v33, %v1609_v17 }
 0x292   :  { %v1767_v43 = vmul.f32 %v2911_v36, %v1744_v27  ;;  %v2091_v13 = vpop.eup %2090  ;;  %v1727_v35 = vsub.f32 %v2878_v51, %v1711_v11  ;;  %v1746_v60 = vmul.f32 -1.4285715, %v1730_v58  ;;  %v1607_v56 = vadd.f32 %v1589_v22, %v2741_v45 }
 0x293   :  { %1796 = vst.msk [vmem:[%s3013_s4 + $0x48] sm:$0xff] %vm1786_vm15, %v1773_v12  ;;  %v2093_v3 = vpop.eup %2092  ;;  %v1710_v42 = vmul.f32 %v2854_v40, %v1598_v21  ;;  %v1587_v36 = vmul.f32 0.6931472, %v2091_v13  ;;  %v1749_v5 = vmul.f32 -1.4285715, %v1733_v7  ;;  %v1647_v51 = vpop.xlane.xlu1 %1646  ;;  %v1608_v46 = vadd.f32 %v1591_v1, %v2647_v32 }
 0x294   :  { %1793 = vst.msk [vmem:[%s3013_s4 + $0x30] sm:$0xff] %vm1786_vm15, %v1767_v43  ;;  %v1653_v63 = vpop.xlane.xlu0 %1652  ;;  %v2095_v57 = vpop.eup %2094  ;;  %v1743_v50 = vmul.f32 -1.4285715, %v1727_v35  ;;  %v1771_v29 = vmul.f32 %v2917_v14, %v1746_v60  ;;  %v1732_v30 = vsub.f32 %v1647_v51, %v1716_v62  ;;  %v1719_v45 = vmul.f32 %v2864_v48, %v1607_v56 }
 0x295   :  { %v1726_v54 = vsub.f32 %v2880_v2, %v1710_v42  ;;  %v1777_v59 = vmul.f32 %v2095_v57, %v1749_v5  ;;  %v1606_v40 = vadd.f32 %v1587_v36, %v2675_v37  ;;  %v2097_v23 = vpop.eup %2096  ;;  %v1720_v6 = vmul.f32 %v2876_v0, %v1608_v46 }
 0x296   :  { %v1765_v20 = vmul.f32 %v2920_v38, %v1743_v50  ;;  %1795 = vst.msk [vmem:[%s3013_s4 + $0x40] sm:$0xff] %vm1786_vm15, %v1771_v29  ;;  %v1748_v55 = vmul.f32 -1.4285715, %v1732_v30  ;;  %v1735_v14 = vsub.f32 %v1653_v63, %v1719_v45  ;;  %v2099_v48 = vpop.eup %2098 }
 0x297   :  { %v1742_v26 = vmul.f32 -1.4285715, %v1726_v54  ;;  %1798 = vst.msk [vmem:[%s3013_s4 + $0x58] sm:$0xff] %vm1786_vm15, %v1777_v59  ;;  %v1718_v37 = vmul.f32 %v2872_v53, %v1606_v40  ;;  %v1651_v33 = vpop.xlane.xlu1 %1650 }
 0x298   :  { %v1657_v2 = vpop.xlane.xlu0 %1656  ;;  %1792 = vst.msk [vmem:[%s3013_s4 + $0x28] sm:$0xff] %vm1786_vm15, %v1765_v20  ;;  %v1775_v38 = vmul.f32 %v2089_v15, %v1748_v55  ;;  %v1751_v24 = vmul.f32 -1.4285715, %v1735_v14 }
 0x299   :  { %v1737_v31 = vsub.f32 %v1657_v2, %v1721_v49  ;;  %v1763_v32 = vmul.f32 %v2894_v61, %v1742_v26  ;;  %v1734_v18 = vsub.f32 %v1651_v33, %v1718_v37  ;;  %v2101_v34 = vpop.eup %2100 }
 0x29a   :  { %1797 = vst.msk [vmem:[%s3013_s4 + $0x50] sm:$0xff] %vm1786_vm15, %v1775_v38  ;;  %v1781_v39 = vmul.f32 %v2097_v23, %v1751_v24 }
 0x29b   :  { %v1753_v53 = vmul.f32 -1.4285715, %v1737_v31  ;;  %1791 = vst.msk [vmem:[%s3013_s4 + $0x20] sm:$0xff] %vm1786_vm15, %v1763_v32  ;;  %v1750_v19 = vmul.f32 -1.4285715, %v1734_v18  ;;  %v1655_v4 = vpop.xlane.xlu1 %1654 }
 0x29c   :  { %1800 = vst.msk [vmem:[%s3013_s4 + $0x68] sm:$0xff] %vm1786_vm15, %v1781_v39  ;;  %v1736_v16 = vsub.f32 %v1655_v4, %v1720_v6 }
 0x29d   :  { %v1785_v61 = vmul.f32 %v2099_v48, %v1753_v53  ;;  %v1779_v8 = vmul.f32 %v2093_v3, %v1750_v19 }
 0x29e   :  { %v1752_v0 = vmul.f32 -1.4285715, %v1736_v16 }
 0x29f   :  { %1802 = vst.msk [vmem:[%s3013_s4 + $0x78] sm:$0xff] %vm1786_vm15, %v1785_v61  ;;  %1799 = vst.msk [vmem:[%s3013_s4 + $0x60] sm:$0xff] %vm1786_vm15, %v1779_v8 }
 0x2a0   :  { %v1783_v9 = vmul.f32 %v2101_v34, %v1752_v0 }
 0x2a2   :  { %1801 = vst.msk [vmem:[%s3013_s4 + $0x70] sm:$0xff] %vm1786_vm15, %v1783_v9 }

</bundles_post_ra>
